<compile_context>
chip_gen: v6e
topology: v6e:2x2x1
jax: 0.10.0
libtpu: 0.0.40
codegen_flags: <defaults>
</compile_context>

<pallas_src>
import functools
import math

import jax
import jax.numpy as jnp
from jax.experimental import pallas as pl
from jax.experimental.pallas import tpu as pltpu

# ----------------------------- config (small, ViT-like) -----------------------------
BATCH       = 2
IN_CH       = 3
IMG         = 16
PATCH       = 8
NUM_PATCHES = (IMG // PATCH) * (IMG // PATCH)        # 4
SEQ_LEN     = NUM_PATCHES + 1                        # 5 (CLS + patches)
SEQ_PAD     = 8                                      # padded to the sublane grain
PATCH_DIM   = IN_CH * PATCH * PATCH                  # 192
EMBED_DIM   = 32                                     # stand-in for 768
NUM_HEADS   = 4
HEAD_DIM    = EMBED_DIM // NUM_HEADS                 # 8
MLP_DIM     = 4 * EMBED_DIM                          # 128
FFN_NUM     = 16                                     # EASE adapter bottleneck
ADAPTER_SCALE = 0.1                                  # ffn_adapter_scalar='0.1'
DEPTH       = 2
INIT_CLS    = 10                                     # proxy_fc output classes
LN_EPS      = 1e-6
NEG_INF     = -1e30

BLOCK_PARAM_ORDER = [
    'ln1_g', 'ln1_b', 'wqkv', 'bqkv', 'wproj', 'bproj',
    'ln2_g', 'ln2_b', 'wfc1', 'bfc1', 'wfc2', 'bfc2',
    'wdown', 'bdown', 'wup', 'bup',
]


# ----------------------------- in-kernel helpers -----------------------------
def _layer_norm(x, gamma, beta):
    mu = jnp.mean(x, axis=-1, keepdims=True)
    var = jnp.mean((x - mu) ** 2, axis=-1, keepdims=True)
    return (x - mu) * jax.lax.rsqrt(var + LN_EPS) * gamma + beta


# ----------------------------- fused forward kernel -----------------------------
def _ease_fwd_kernel(
        patches_ref, pw_ref, pb_ref, cls_ref, pos_ref,
        g1_ref, b1_ref, wqkv_ref, bqkv_ref, wo_ref, bo_ref,
        g2_ref, b2_ref, wf1_ref, bf1_ref, wf2_ref, bf2_ref,
        wd_ref, bd_ref, wu_ref, bu_ref,
        ng_ref, nb_ref, pwc_ref, sig_ref,
        logit_ref, feat_ref,
        x_sc):
    layer = pl.program_id(0)

    # -------- layer 0: fused patch-embed matmul + CLS/pos token assembly --------
    @pl.when(layer == 0)
    def _embed():
        emb = (jnp.dot(patches_ref[...], pw_ref[...],
                       preferred_element_type=jnp.float32)
               + pb_ref[...])                                  # [B*T_pad, D] f32
        emb = emb.reshape(BATCH, SEQ_PAD, EMBED_DIM)
        tok_id = jax.lax.broadcasted_iota(jnp.int32, (BATCH, SEQ_PAD, 1), 1)
        cls_row = cls_ref[...] + pos_ref[0:1, :]               # [1, D]
        tok = jnp.where(
            tok_id == 0, cls_row,
            jnp.where(tok_id <= NUM_PATCHES, emb + pos_ref[...], 0.0))
        x_sc[...] = tok.reshape(BATCH * SEQ_PAD, EMBED_DIM)

    # -------- ViT block `layer` with EASE parallel adapter --------
    x = x_sc[...]                                              # [B*T_pad, D] f32

    # multi-head self-attention (pre-norm); batch+seq rows fused for the matmuls
    xn = _layer_norm(x, g1_ref[...], b1_ref[...])
    qkv = (jnp.dot(xn.astype(jnp.bfloat16), wqkv_ref[...],
                   preferred_element_type=jnp.float32)
           + bqkv_ref[...])                                    # [B*T_pad, 3D] f32
    wproj = wo_ref[...]                                        # [D, D] bf16

    key_mask = jnp.where(
        jax.lax.broadcasted_iota(jnp.int32, (1, 1, SEQ_PAD), 2) < SEQ_LEN,
        0.0, NEG_INF)                                          # mask padded keys
    scale = 1.0 / math.sqrt(HEAD_DIM)

    attn = jnp.zeros((BATCH * SEQ_PAD, EMBED_DIM), jnp.float32)
    for h in range(NUM_HEADS):
        q = qkv[:, h * HEAD_DIM:(h + 1) * HEAD_DIM]
        k = qkv[:, EMBED_DIM + h * HEAD_DIM:EMBED_DIM + (h + 1) * HEAD_DIM]
        v = qkv[:, 2 * EMBED_DIM + h * HEAD_DIM:2 * EMBED_DIM + (h + 1) * HEAD_DIM]
        q = q.reshape(BATCH, SEQ_PAD, HEAD_DIM)
        k = k.reshape(BATCH, SEQ_PAD, HEAD_DIM)
        v = v.reshape(BATCH, SEQ_PAD, HEAD_DIM)
        s = jnp.einsum('bqd,bkd->bqk', q, k,
                       preferred_element_type=jnp.float32) * scale + key_mask
        s = s - jnp.max(s, axis=-1, keepdims=True)
        e = jnp.exp(s)
        p = e * pl.reciprocal(jnp.sum(e, axis=-1, keepdims=True), approx=True)
        o = jnp.einsum('bqk,bkd->bqd', p, v,
                       preferred_element_type=jnp.float32)     # [B, T_pad, Hd]
        # concat-free head merge: concat(heads) @ Wproj == sum_h head_h @ Wproj[rows_h]
        attn = attn + jnp.dot(
            o.reshape(BATCH * SEQ_PAD, HEAD_DIM).astype(jnp.bfloat16),
            wproj[h * HEAD_DIM:(h + 1) * HEAD_DIM, :],
            preferred_element_type=jnp.float32)
    x = x + attn + bo_ref[...]

    # EASE parallel adapter (ffn_option='parallel', ln option 'none', scale 0.1);
    # input is the post-attention residual x (parallel to the MLP branch).
    xb = x.astype(jnp.bfloat16)
    ad = jnp.maximum(
        jnp.dot(xb, wd_ref[...], preferred_element_type=jnp.float32) + bd_ref[...],
        0.0)                                                   # ReLU
    ad = (jnp.dot(ad.astype(jnp.bfloat16), wu_ref[...],
                  preferred_element_type=jnp.float32)
          + bu_ref[...]) * ADAPTER_SCALE

    # MLP (pre-norm)
    xn2 = _layer_norm(x, g2_ref[...], b2_ref[...])
    h1 = (jnp.dot(xn2.astype(jnp.bfloat16), wf1_ref[...],
                  preferred_element_type=jnp.float32) + bf1_ref[...])
    # torch nn.GELU uses exact erf; tanh approximation used here for TPU lowering.
    # TODO(synk): switch to exact-erf GELU if bit-level parity with torch is required.
    h1 = jax.nn.gelu(h1, approximate=True)
    mlp = (jnp.dot(h1.astype(jnp.bfloat16), wf2_ref[...],
                   preferred_element_type=jnp.float32) + bf2_ref[...])

    x_new = x + mlp + ad
    x_sc[...] = x_new

    # -------- last layer: final LN on CLS + CosineLinear proxy_fc --------
    @pl.when(layer == DEPTH - 1)
    def _head():
        cls_tok = x_new.reshape(BATCH, SEQ_PAD, EMBED_DIM)[:, 0:1, :]
        cls_tok = cls_tok.reshape(BATCH, EMBED_DIM)
        cls_n = _layer_norm(cls_tok, ng_ref[...], nb_ref[...])
        feat_ref[...] = cls_n
        # F.normalize(p=2, dim=1), eps=1e-12  ->  clamp sum-of-squares at 1e-24
        xn_ = cls_n * jax.lax.rsqrt(
            jnp.maximum(jnp.sum(cls_n * cls_n, axis=-1, keepdims=True), 1e-24))
        w = pwc_ref[...]                                       # [C, D] f32
        wn = w * jax.lax.rsqrt(
            jnp.maximum(jnp.sum(w * w, axis=-1, keepdims=True), 1e-24))
        logit_ref[...] = jax.lax.dot_general(
            xn_, wn, (((1,), (1,)), ((), ())),
            preferred_element_type=jnp.float32) * sig_ref[...]  # sigma * cos-sim


# ----------------------------- parameter init (deterministic, synthetic) -----------------------------
def init_params(key):
    keys = iter(jax.random.split(key, 64))

    def dense(shape, dtype=jnp.float32, scale=0.02):
        return (scale * jax.random.normal(next(keys), shape)).astype(dtype)

    bf16 = jnp.bfloat16
    params = {
        # weights pre-transposed ([in, out]) so kernels compute x @ W (== torch x @ W.T);
        # MXU-operand weights stored in bf16, biases / LN params in f32.
        'patch_w': dense((PATCH_DIM, EMBED_DIM), bf16),
        'patch_b': jnp.zeros((1, EMBED_DIM), jnp.float32),
        'cls':     dense((1, EMBED_DIM)),
        'pos':     dense((SEQ_LEN, EMBED_DIM)),
        'norm_g':  jnp.ones((1, EMBED_DIM), jnp.float32),
        'norm_b':  jnp.zeros((1, EMBED_DIM), jnp.float32),
        # CosineLinear proxy_fc: weight [out, in], sigma scalar (init 1.0)
        'proxy_w': dense((INIT_CLS, EMBED_DIM)),
        'sigma':   jnp.ones((1, 1), jnp.float32),
        # per-block params stacked on a leading layer axis (streamed by the grid)
        'blocks': {
            'ln1_g': jnp.ones((DEPTH, 1, EMBED_DIM), jnp.float32),
            'ln1_b': jnp.zeros((DEPTH, 1, EMBED_DIM), jnp.float32),
            'wqkv':  dense((DEPTH, EMBED_DIM, 3 * EMBED_DIM), bf16),
            'bqkv':  jnp.zeros((DEPTH, 1, 3 * EMBED_DIM), jnp.float32),
            'wproj': dense((DEPTH, EMBED_DIM, EMBED_DIM), bf16),
            'bproj': jnp.zeros((DEPTH, 1, EMBED_DIM), jnp.float32),
            'ln2_g': jnp.ones((DEPTH, 1, EMBED_DIM), jnp.float32),
            'ln2_b': jnp.zeros((DEPTH, 1, EMBED_DIM), jnp.float32),
            'wfc1':  dense((DEPTH, EMBED_DIM, MLP_DIM), bf16),
            'bfc1':  jnp.zeros((DEPTH, 1, MLP_DIM), jnp.float32),
            'wfc2':  dense((DEPTH, MLP_DIM, EMBED_DIM), bf16),
            'bfc2':  jnp.zeros((DEPTH, 1, EMBED_DIM), jnp.float32),
            # EASE 'lora' init zeroes up_proj; small random here so the adapter path is exercised.
            'wdown': dense((DEPTH, EMBED_DIM, FFN_NUM), bf16),
            'bdown': jnp.zeros((DEPTH, 1, FFN_NUM), jnp.float32),
            'wup':   dense((DEPTH, FFN_NUM, EMBED_DIM), bf16),
            'bup':   jnp.zeros((DEPTH, 1, EMBED_DIM), jnp.float32),
        },
    }
    return params


# ----------------------------- EaseNet.forward (test=False path) -----------------------------
def ease_forward(params, x):
    # TODO(synk): test=True path (concatenated multi-adapter features + fc.forward_reweight)
    # not implemented; only the training-time path `backbone(x, False) -> proxy_fc` is translated.
    B, C, H, W = x.shape
    p = PATCH
    # patchify (matches Conv2d(kernel=stride=patch): patch flattened in (C, ph, pw) order)
    patches = x.reshape(B, C, H // p, p, W // p, p)
    patches = patches.transpose(0, 2, 4, 1, 3, 5).reshape(B, NUM_PATCHES, PATCH_DIM)
    # pad token axis to SEQ_PAD: row 0 reserved for CLS, rows > NUM_PATCHES are padding
    patches = jnp.pad(patches, ((0, 0), (1, SEQ_PAD - 1 - NUM_PATCHES), (0, 0)))
    patches = patches.reshape(B * SEQ_PAD, PATCH_DIM).astype(jnp.bfloat16)
    pos = jnp.pad(params['pos'], ((0, SEQ_PAD - SEQ_LEN), (0, 0)))   # [SEQ_PAD, D]

    blk = params['blocks']

    def _full(a):
        return pl.BlockSpec(a.shape, lambda l: (0,) * a.ndim)

    def _per_layer(a):                                # stacked [DEPTH, r, c]
        return pl.BlockSpec((None,) + tuple(a.shape[1:]), lambda l: (l, 0, 0))

    in_specs = (
        [_full(patches), _full(params['patch_w']), _full(params['patch_b']),
         _full(params['cls']), _full(pos)]
        + [_per_layer(blk[k]) for k in BLOCK_PARAM_ORDER]
        + [_full(params['norm_g']), _full(params['norm_b']),
           _full(params['proxy_w']), _full(params['sigma'])]
    )

    logits, feats = pl.pallas_call(
        _ease_fwd_kernel,
        out_shape=(jax.ShapeDtypeStruct((B, INIT_CLS), jnp.float32),
                   jax.ShapeDtypeStruct((B, EMBED_DIM), jnp.float32)),
        grid=(DEPTH,),
        in_specs=in_specs,
        out_specs=(pl.BlockSpec((B, INIT_CLS), lambda l: (0, 0)),
                   pl.BlockSpec((B, EMBED_DIM), lambda l: (0, 0))),
        scratch_shapes=[pltpu.VMEM((B * SEQ_PAD, EMBED_DIM), jnp.float32)],
        compiler_params=pltpu.CompilerParams(dimension_semantics=("arbitrary",)),
    )(patches, params['patch_w'], params['patch_b'], params['cls'], pos,
      *[blk[k] for k in BLOCK_PARAM_ORDER],
      params['norm_g'], params['norm_b'], params['proxy_w'], params['sigma'])

    # CosineLinear returns {'logits': ...}; EaseNet.forward adds 'features'
    return {'logits': logits, 'features': feats}


if __name__ == "__main__":
    x = jax.random.normal(jax.random.PRNGKey(0), (BATCH, IN_CH, IMG, IMG), jnp.float32)
    params = init_params(jax.random.PRNGKey(1))

    fwd = jax.jit(functools.partial(ease_forward, params))
    out = fwd(x)
    jax.block_until_ready(out['logits'])
    jax.block_until_ready(out['features'])

    assert out['logits'].shape == (BATCH, INIT_CLS)
    assert out['features'].shape == (BATCH, EMBED_DIM)
    assert bool(jnp.all(jnp.isfinite(out['logits'])))
    assert bool(jnp.all(jnp.isfinite(out['features'])))
    print("KERNEL_OK")
</pallas_src>

<mosaic_0001>
module attributes {stable_mosaic.version = 11 : i64} {
  func.func @_ease_fwd_kernel(%arg0: i32, %arg1: memref<16x192xbf16, #tpu.memory_space<vmem>>, %arg2: memref<192x32xbf16, #tpu.memory_space<vmem>>, %arg3: memref<1x32xf32, #tpu.memory_space<vmem>>, %arg4: memref<1x32xf32, #tpu.memory_space<vmem>>, %arg5: memref<8x32xf32, #tpu.memory_space<vmem>>, %arg6: memref<1x1x32xf32, #tpu.memory_space<vmem>>, %arg7: memref<1x1x32xf32, #tpu.memory_space<vmem>>, %arg8: memref<1x32x96xbf16, #tpu.memory_space<vmem>>, %arg9: memref<1x1x96xf32, #tpu.memory_space<vmem>>, %arg10: memref<1x32x32xbf16, #tpu.memory_space<vmem>>, %arg11: memref<1x1x32xf32, #tpu.memory_space<vmem>>, %arg12: memref<1x1x32xf32, #tpu.memory_space<vmem>>, %arg13: memref<1x1x32xf32, #tpu.memory_space<vmem>>, %arg14: memref<1x32x128xbf16, #tpu.memory_space<vmem>>, %arg15: memref<1x1x128xf32, #tpu.memory_space<vmem>>, %arg16: memref<1x128x32xbf16, #tpu.memory_space<vmem>>, %arg17: memref<1x1x32xf32, #tpu.memory_space<vmem>>, %arg18: memref<1x32x16xbf16, #tpu.memory_space<vmem>>, %arg19: memref<1x1x16xf32, #tpu.memory_space<vmem>>, %arg20: memref<1x16x32xbf16, #tpu.memory_space<vmem>>, %arg21: memref<1x1x32xf32, #tpu.memory_space<vmem>>, %arg22: memref<1x32xf32, #tpu.memory_space<vmem>>, %arg23: memref<1x32xf32, #tpu.memory_space<vmem>>, %arg24: memref<10x32xf32, #tpu.memory_space<vmem>>, %arg25: memref<1x1xf32, #tpu.memory_space<vmem>>, %arg26: memref<2x10xf32, #tpu.memory_space<vmem>>, %arg27: memref<2x32xf32, #tpu.memory_space<vmem>>, %arg28: memref<16x32xf32, #tpu.memory_space<vmem>>) attributes {dimension_semantics = [#tpu.dimension_semantics<arbitrary>], iteration_bounds = array<i64: 2>, scalar_prefetch = 0 : i64, scratch_operands = 1 : i64, tpu.core_type = #tpu.core_type<tc>, window_params = [{pipeline_mode = #tpu.pipeline_mode<synchronous>, transform_indices = @transform_0, window_bounds = array<i64: 16, 192>}, {pipeline_mode = #tpu.pipeline_mode<synchronous>, transform_indices = @transform_1, window_bounds = array<i64: 192, 32>}, {pipeline_mode = #tpu.pipeline_mode<synchronous>, transform_indices = @transform_2, window_bounds = array<i64: 1, 32>}, {pipeline_mode = #tpu.pipeline_mode<synchronous>, transform_indices = @transform_3, window_bounds = array<i64: 1, 32>}, {pipeline_mode = #tpu.pipeline_mode<synchronous>, transform_indices = @transform_4, window_bounds = array<i64: 8, 32>}, {transform_indices = @transform_5, window_bounds = array<i64: 1, 1, 32>}, {transform_indices = @transform_6, window_bounds = array<i64: 1, 1, 32>}, {transform_indices = @transform_7, window_bounds = array<i64: 1, 32, 96>}, {transform_indices = @transform_8, window_bounds = array<i64: 1, 1, 96>}, {transform_indices = @transform_9, window_bounds = array<i64: 1, 32, 32>}, {transform_indices = @transform_10, window_bounds = array<i64: 1, 1, 32>}, {transform_indices = @transform_11, window_bounds = array<i64: 1, 1, 32>}, {transform_indices = @transform_12, window_bounds = array<i64: 1, 1, 32>}, {transform_indices = @transform_13, window_bounds = array<i64: 1, 32, 128>}, {transform_indices = @transform_14, window_bounds = array<i64: 1, 1, 128>}, {transform_indices = @transform_15, window_bounds = array<i64: 1, 128, 32>}, {transform_indices = @transform_16, window_bounds = array<i64: 1, 1, 32>}, {transform_indices = @transform_17, window_bounds = array<i64: 1, 32, 16>}, {transform_indices = @transform_18, window_bounds = array<i64: 1, 1, 16>}, {transform_indices = @transform_19, window_bounds = array<i64: 1, 16, 32>}, {transform_indices = @transform_20, window_bounds = array<i64: 1, 1, 32>}, {pipeline_mode = #tpu.pipeline_mode<synchronous>, transform_indices = @transform_21, window_bounds = array<i64: 1, 32>}, {pipeline_mode = #tpu.pipeline_mode<synchronous>, transform_indices = @transform_22, window_bounds = array<i64: 1, 32>}, {pipeline_mode = #tpu.pipeline_mode<synchronous>, transform_indices = @transform_23, window_bounds = array<i64: 10, 32>}, {pipeline_mode = #tpu.pipeline_mode<synchronous>, transform_indices = @transform_24, window_bounds = array<i64: 1, 1>}, {pipeline_mode = #tpu.pipeline_mode<synchronous>, transform_indices = @transform_25, window_bounds = array<i64: 2, 10>}, {pipeline_mode = #tpu.pipeline_mode<synchronous>, transform_indices = @transform_26, window_bounds = array<i64: 2, 32>}]} {
    %c0_i32 = arith.constant 0 : i32
    %0 = arith.cmpi eq, %arg0, %c0_i32 : i32
    %1 = arith.extui %0 : i1 to i32
    %c0_i32_0 = arith.constant 0 : i32
    %2 = arith.cmpi ne, %1, %c0_i32_0 : i32
    scf.if %2 {
      %c0_100 = arith.constant 0 : index
      %c0_101 = arith.constant 0 : index
      %241 = vector.load %arg1[%c0_100, %c0_101] : memref<16x192xbf16, #tpu.memory_space<vmem>>, vector<16x192xbf16>
      %c0_102 = arith.constant 0 : index
      %c0_103 = arith.constant 0 : index
      %242 = vector.load %arg2[%c0_102, %c0_103] : memref<192x32xbf16, #tpu.memory_space<vmem>>, vector<192x32xbf16>
      %cst_104 = arith.constant dense<0.000000e+00> : vector<16x32xf32>
      %243 = tpu.matmul %241, %242, %cst_104 {dimension_numbers = #tpu.dot_dimension_numbers<[1], [0], [0], [1], [0, 0, 1, 1], [], []>} : vector<16x192xbf16>, vector<192x32xbf16>, vector<16x32xf32> -> vector<16x32xf32>
      %c0_105 = arith.constant 0 : index
      %c0_106 = arith.constant 0 : index
      %244 = vector.load %arg3[%c0_105, %c0_106] : memref<1x32xf32, #tpu.memory_space<vmem>>, vector<1x32xf32>
      %245 = vector.broadcast %244 : vector<1x32xf32> to vector<16x32xf32>
      %246 = arith.addf %243, %245 : vector<16x32xf32>
      %247 = vector.shape_cast %246 : vector<16x32xf32> to vector<2x8x32xf32>
      %248 = tpu.iota {dimensions = array<i32: 1>} : vector<2x8x1xi32>
      %c0_107 = arith.constant 0 : index
      %c0_108 = arith.constant 0 : index
      %249 = vector.load %arg4[%c0_107, %c0_108] : memref<1x32xf32, #tpu.memory_space<vmem>>, vector<1x32xf32>
      %c0_109 = arith.constant 0 : index
      %c0_110 = arith.constant 0 : index
      %250 = vector.load %arg5[%c0_109, %c0_110] : memref<8x32xf32, #tpu.memory_space<vmem>>, vector<1x32xf32>
      %251 = arith.addf %249, %250 : vector<1x32xf32>
      %c0_i32_111 = arith.constant 0 : i32
      %252 = vector.broadcast %c0_i32_111 : i32 to vector<2x8x1xi32>
      %253 = arith.cmpi eq, %248, %252 : vector<2x8x1xi32>
      %c4_i32 = arith.constant 4 : i32
      %254 = vector.broadcast %c4_i32 : i32 to vector<2x8x1xi32>
      %255 = arith.cmpi sle, %248, %254 : vector<2x8x1xi32>
      %c0_112 = arith.constant 0 : index
      %c0_113 = arith.constant 0 : index
      %256 = vector.load %arg5[%c0_112, %c0_113] : memref<8x32xf32, #tpu.memory_space<vmem>>, vector<8x32xf32>
      %257 = vector.shape_cast %256 : vector<8x32xf32> to vector<1x8x32xf32>
      %258 = vector.broadcast %257 : vector<1x8x32xf32> to vector<2x8x32xf32>
      %259 = arith.addf %247, %258 : vector<2x8x32xf32>
      %cst_114 = arith.constant 0.000000e+00 : f32
      %260 = vector.shape_cast %255 : vector<2x8x1xi1> to vector<2x8x1xi1>
      %261 = vector.broadcast %260 : vector<2x8x1xi1> to vector<2x8x32xi1>
      %262 = vector.broadcast %cst_114 : f32 to vector<2x8x32xf32>
      %263 = arith.select %261, %259, %262 : vector<2x8x32xi1>, vector<2x8x32xf32>
      %264 = vector.shape_cast %253 : vector<2x8x1xi1> to vector<2x8x1xi1>
      %265 = vector.broadcast %264 : vector<2x8x1xi1> to vector<2x8x32xi1>
      %266 = vector.shape_cast %251 : vector<1x32xf32> to vector<1x1x32xf32>
      %267 = vector.broadcast %266 : vector<1x1x32xf32> to vector<2x8x32xf32>
      %268 = arith.select %265, %267, %263 : vector<2x8x32xi1>, vector<2x8x32xf32>
      %269 = vector.shape_cast %268 : vector<2x8x32xf32> to vector<16x32xf32>
      %c0_115 = arith.constant 0 : index
      %c0_116 = arith.constant 0 : index
      %270 = vector.load %arg28[%c0_115, %c0_116] : memref<16x32xf32, #tpu.memory_space<vmem>>, vector<16x32xf32>
      tpu.vector_store %arg28[%c0_115, %c0_116], %269 {strides = array<i32>} : memref<16x32xf32, #tpu.memory_space<vmem>>, vector<16x32xf32>,
    } else {
    }
    %c0 = arith.constant 0 : index
    %c0_1 = arith.constant 0 : index
    %3 = vector.load %arg28[%c0, %c0_1] : memref<16x32xf32, #tpu.memory_space<vmem>>, vector<16x32xf32>
    %c0_2 = arith.constant 0 : index
    %c0_3 = arith.constant 0 : index
    %c0_4 = arith.constant 0 : index
    %4 = vector.load %arg6[%c0_2, %c0_3, %c0_4] : memref<1x1x32xf32, #tpu.memory_space<vmem>>, vector<1x1x32xf32>
    %5 = vector.shape_cast %4 : vector<1x1x32xf32> to vector<1x32xf32>
    %c0_5 = arith.constant 0 : index
    %c0_6 = arith.constant 0 : index
    %c0_7 = arith.constant 0 : index
    %6 = vector.load %arg7[%c0_5, %c0_6, %c0_7] : memref<1x1x32xf32, #tpu.memory_space<vmem>>, vector<1x1x32xf32>
    %7 = vector.shape_cast %6 : vector<1x1x32xf32> to vector<1x32xf32>
    %cst = arith.constant dense<0.000000e+00> : vector<16xf32>
    %8 = vector.multi_reduction <add>, %3, %cst [1] : vector<16x32xf32> to vector<16xf32>
    %9 = vector.shape_cast %8 : vector<16xf32> to vector<16x1xf32>
    %cst_8 = arith.constant 3.200000e+01 : f32
    %10 = vector.broadcast %cst_8 : f32 to vector<16x1xf32>
    %11 = arith.divf %9, %10 : vector<16x1xf32>
    %12 = vector.broadcast %11 : vector<16x1xf32> to vector<16x32xf32>
    %13 = arith.subf %3, %12 : vector<16x32xf32>
    %14 = arith.mulf %13, %13 : vector<16x32xf32>
    %cst_9 = arith.constant dense<0.000000e+00> : vector<16xf32>
    %15 = vector.multi_reduction <add>, %14, %cst_9 [1] : vector<16x32xf32> to vector<16xf32>
    %16 = vector.shape_cast %15 : vector<16xf32> to vector<16x1xf32>
    %cst_10 = arith.constant 3.200000e+01 : f32
    %17 = vector.broadcast %cst_10 : f32 to vector<16x1xf32>
    %18 = arith.divf %16, %17 : vector<16x1xf32>
    %19 = vector.broadcast %11 : vector<16x1xf32> to vector<16x32xf32>
    %20 = arith.subf %3, %19 : vector<16x32xf32>
    %cst_11 = arith.constant 9.99999997E-7 : f32
    %21 = vector.broadcast %cst_11 : f32 to vector<16x1xf32>
    %22 = arith.addf %18, %21 : vector<16x1xf32>
    %23 = math.rsqrt %22 : vector<16x1xf32>
    %24 = vector.broadcast %23 : vector<16x1xf32> to vector<16x32xf32>
    %25 = arith.mulf %20, %24 : vector<16x32xf32>
    %26 = vector.broadcast %5 : vector<1x32xf32> to vector<16x32xf32>
    %27 = arith.mulf %25, %26 : vector<16x32xf32>
    %28 = vector.broadcast %7 : vector<1x32xf32> to vector<16x32xf32>
    %29 = arith.addf %27, %28 : vector<16x32xf32>
    %30 = arith.truncf %29 : vector<16x32xf32> to vector<16x32xbf16>
    %c0_12 = arith.constant 0 : index
    %c0_13 = arith.constant 0 : index
    %c0_14 = arith.constant 0 : index
    %31 = vector.load %arg8[%c0_12, %c0_13, %c0_14] : memref<1x32x96xbf16, #tpu.memory_space<vmem>>, vector<1x32x96xbf16>
    %32 = vector.shape_cast %31 : vector<1x32x96xbf16> to vector<32x96xbf16>
    %cst_15 = arith.constant dense<0.000000e+00> : vector<16x96xf32>
    %33 = tpu.matmul %30, %32, %cst_15 {dimension_numbers = #tpu.dot_dimension_numbers<[1], [0], [0], [1], [0, 0, 1, 1], [], []>} : vector<16x32xbf16>, vector<32x96xbf16>, vector<16x96xf32> -> vector<16x96xf32>
    %c0_16 = arith.constant 0 : index
    %c0_17 = arith.constant 0 : index
    %c0_18 = arith.constant 0 : index
    %34 = vector.load %arg9[%c0_16, %c0_17, %c0_18] : memref<1x1x96xf32, #tpu.memory_space<vmem>>, vector<1x1x96xf32>
    %35 = vector.shape_cast %34 : vector<1x1x96xf32> to vector<1x96xf32>
    %36 = vector.broadcast %35 : vector<1x96xf32> to vector<16x96xf32>
    %37 = arith.addf %33, %36 : vector<16x96xf32>
    %c0_19 = arith.constant 0 : index
    %c0_20 = arith.constant 0 : index
    %c0_21 = arith.constant 0 : index
    %38 = vector.load %arg10[%c0_19, %c0_20, %c0_21] : memref<1x32x32xbf16, #tpu.memory_space<vmem>>, vector<1x32x32xbf16>
    %39 = vector.shape_cast %38 : vector<1x32x32xbf16> to vector<32x32xbf16>
    %40 = tpu.iota {dimensions = array<i32: 2>} : vector<1x1x8xi32>
    %c5_i32 = arith.constant 5 : i32
    %41 = vector.broadcast %c5_i32 : i32 to vector<1x1x8xi32>
    %42 = arith.cmpi slt, %40, %41 : vector<1x1x8xi32>
    %cst_22 = arith.constant 0.000000e+00 : f32
    %cst_23 = arith.constant -1.000000e+30 : f32
    %43 = vector.broadcast %cst_22 : f32 to vector<1x1x8xf32>
    %44 = vector.broadcast %cst_23 : f32 to vector<1x1x8xf32>
    %45 = arith.select %42, %43, %44 : vector<1x1x8xi1>, vector<1x1x8xf32>
    %cst_24 = arith.constant 0.000000e+00 : f32
    %46 = vector.broadcast %cst_24 : f32 to vector<16x32xf32>
    %47 = vector.extract_strided_slice %37 {offsets = [0, 0], sizes = [16, 8], strides = [1, 1]} : vector<16x96xf32> to vector<16x8xf32>
    %48 = vector.extract_strided_slice %37 {offsets = [0, 32], sizes = [16, 8], strides = [1, 1]} : vector<16x96xf32> to vector<16x8xf32>
    %49 = vector.extract_strided_slice %37 {offsets = [0, 64], sizes = [16, 8], strides = [1, 1]} : vector<16x96xf32> to vector<16x8xf32>
    %50 = vector.shape_cast %47 : vector<16x8xf32> to vector<2x8x8xf32>
    %51 = vector.shape_cast %48 : vector<16x8xf32> to vector<2x8x8xf32>
    %52 = vector.shape_cast %49 : vector<16x8xf32> to vector<2x8x8xf32>
    "tpu.trace_start"() <{level = 10 : i32, message = "bqd,bkd->bqk"}> : () -> ()
    %cst_25 = arith.constant dense<0.000000e+00> : vector<2x8x8xf32>
    %53 = tpu.matmul %50, %51, %cst_25 {dimension_numbers = #tpu.dot_dimension_numbers<[2], [2], [1], [1], [0, 0, 0, 1, 1, 1], [0], [0]>} : vector<2x8x8xf32>, vector<2x8x8xf32>, vector<2x8x8xf32> -> vector<2x8x8xf32>
    "tpu.trace_stop"() : () -> ()
    %cst_26 = arith.constant 0.353553385 : f32
    %54 = vector.broadcast %cst_26 : f32 to vector<2x8x8xf32>
    %55 = arith.mulf %53, %54 : vector<2x8x8xf32>
    %56 = vector.broadcast %45 : vector<1x1x8xf32> to vector<2x8x8xf32>
    %57 = arith.addf %55, %56 : vector<2x8x8xf32>
    %cst_27 = arith.constant dense<0xFF800000> : vector<2x8xf32>
    %58 = vector.multi_reduction <maximumf>, %57, %cst_27 [2] : vector<2x8x8xf32> to vector<2x8xf32>
    %59 = vector.shape_cast %58 : vector<2x8xf32> to vector<2x8x1xf32>
    %60 = vector.broadcast %59 : vector<2x8x1xf32> to vector<2x8x8xf32>
    %61 = arith.subf %57, %60 : vector<2x8x8xf32>
    %62 = math.exp %61 : vector<2x8x8xf32>
    %cst_28 = arith.constant dense<0.000000e+00> : vector<2x8xf32>
    %63 = vector.multi_reduction <add>, %62, %cst_28 [2] : vector<2x8x8xf32> to vector<2x8xf32>
    %64 = vector.shape_cast %63 : vector<2x8xf32> to vector<2x8x1xf32>
    %65 = tpu.reciprocal %64 {approx = true} : vector<2x8x1xf32> -> vector<2x8x1xf32>
    %66 = vector.broadcast %65 : vector<2x8x1xf32> to vector<2x8x8xf32>
    %67 = arith.mulf %62, %66 : vector<2x8x8xf32>
    "tpu.trace_start"() <{level = 10 : i32, message = "bqk,bkd->bqd"}> : () -> ()
    %cst_29 = arith.constant dense<0.000000e+00> : vector<2x8x8xf32>
    %68 = tpu.matmul %67, %52, %cst_29 {dimension_numbers = #tpu.dot_dimension_numbers<[2], [1], [1], [2], [0, 0, 0, 1, 1, 2], [0], [0]>} : vector<2x8x8xf32>, vector<2x8x8xf32>, vector<2x8x8xf32> -> vector<2x8x8xf32>
    "tpu.trace_stop"() : () -> ()
    %69 = vector.shape_cast %68 : vector<2x8x8xf32> to vector<16x8xf32>
    %70 = arith.truncf %69 : vector<16x8xf32> to vector<16x8xbf16>
    %71 = vector.extract_strided_slice %39 {offsets = [0, 0], sizes = [8, 32], strides = [1, 1]} : vector<32x32xbf16> to vector<8x32xbf16>
    %cst_30 = arith.constant dense<0.000000e+00> : vector<16x32xf32>
    %72 = tpu.matmul %70, %71, %cst_30 {dimension_numbers = #tpu.dot_dimension_numbers<[1], [0], [0], [1], [0, 0, 1, 1], [], []>} : vector<16x8xbf16>, vector<8x32xbf16>, vector<16x32xf32> -> vector<16x32xf32>
    %73 = arith.addf %46, %72 : vector<16x32xf32>
    %74 = vector.extract_strided_slice %37 {offsets = [0, 8], sizes = [16, 8], strides = [1, 1]} : vector<16x96xf32> to vector<16x8xf32>
    %75 = vector.extract_strided_slice %37 {offsets = [0, 40], sizes = [16, 8], strides = [1, 1]} : vector<16x96xf32> to vector<16x8xf32>
    %76 = vector.extract_strided_slice %37 {offsets = [0, 72], sizes = [16, 8], strides = [1, 1]} : vector<16x96xf32> to vector<16x8xf32>
    %77 = vector.shape_cast %74 : vector<16x8xf32> to vector<2x8x8xf32>
    %78 = vector.shape_cast %75 : vector<16x8xf32> to vector<2x8x8xf32>
    %79 = vector.shape_cast %76 : vector<16x8xf32> to vector<2x8x8xf32>
    "tpu.trace_start"() <{level = 10 : i32, message = "bqd,bkd->bqk"}> : () -> ()
    %cst_31 = arith.constant dense<0.000000e+00> : vector<2x8x8xf32>
    %80 = tpu.matmul %77, %78, %cst_31 {dimension_numbers = #tpu.dot_dimension_numbers<[2], [2], [1], [1], [0, 0, 0, 1, 1, 1], [0], [0]>} : vector<2x8x8xf32>, vector<2x8x8xf32>, vector<2x8x8xf32> -> vector<2x8x8xf32>
    "tpu.trace_stop"() : () -> ()
    %cst_32 = arith.constant 0.353553385 : f32
    %81 = vector.broadcast %cst_32 : f32 to vector<2x8x8xf32>
    %82 = arith.mulf %80, %81 : vector<2x8x8xf32>
    %83 = vector.broadcast %45 : vector<1x1x8xf32> to vector<2x8x8xf32>
    %84 = arith.addf %82, %83 : vector<2x8x8xf32>
    %cst_33 = arith.constant dense<0xFF800000> : vector<2x8xf32>
    %85 = vector.multi_reduction <maximumf>, %84, %cst_33 [2] : vector<2x8x8xf32> to vector<2x8xf32>
    %86 = vector.shape_cast %85 : vector<2x8xf32> to vector<2x8x1xf32>
    %87 = vector.broadcast %86 : vector<2x8x1xf32> to vector<2x8x8xf32>
    %88 = arith.subf %84, %87 : vector<2x8x8xf32>
    %89 = math.exp %88 : vector<2x8x8xf32>
    %cst_34 = arith.constant dense<0.000000e+00> : vector<2x8xf32>
    %90 = vector.multi_reduction <add>, %89, %cst_34 [2] : vector<2x8x8xf32> to vector<2x8xf32>
    %91 = vector.shape_cast %90 : vector<2x8xf32> to vector<2x8x1xf32>
    %92 = tpu.reciprocal %91 {approx = true} : vector<2x8x1xf32> -> vector<2x8x1xf32>
    %93 = vector.broadcast %92 : vector<2x8x1xf32> to vector<2x8x8xf32>
    %94 = arith.mulf %89, %93 : vector<2x8x8xf32>
    "tpu.trace_start"() <{level = 10 : i32, message = "bqk,bkd->bqd"}> : () -> ()
    %cst_35 = arith.constant dense<0.000000e+00> : vector<2x8x8xf32>
    %95 = tpu.matmul %94, %79, %cst_35 {dimension_numbers = #tpu.dot_dimension_numbers<[2], [1], [1], [2], [0, 0, 0, 1, 1, 2], [0], [0]>} : vector<2x8x8xf32>, vector<2x8x8xf32>, vector<2x8x8xf32> -> vector<2x8x8xf32>
    "tpu.trace_stop"() : () -> ()
    %96 = vector.shape_cast %95 : vector<2x8x8xf32> to vector<16x8xf32>
    %97 = arith.truncf %96 : vector<16x8xf32> to vector<16x8xbf16>
    %98 = vector.extract_strided_slice %39 {offsets = [8, 0], sizes = [8, 32], strides = [1, 1]} : vector<32x32xbf16> to vector<8x32xbf16>
    %cst_36 = arith.constant dense<0.000000e+00> : vector<16x32xf32>
    %99 = tpu.matmul %97, %98, %cst_36 {dimension_numbers = #tpu.dot_dimension_numbers<[1], [0], [0], [1], [0, 0, 1, 1], [], []>} : vector<16x8xbf16>, vector<8x32xbf16>, vector<16x32xf32> -> vector<16x32xf32>
    %100 = arith.addf %73, %99 : vector<16x32xf32>
    %101 = vector.extract_strided_slice %37 {offsets = [0, 16], sizes = [16, 8], strides = [1, 1]} : vector<16x96xf32> to vector<16x8xf32>
    %102 = vector.extract_strided_slice %37 {offsets = [0, 48], sizes = [16, 8], strides = [1, 1]} : vector<16x96xf32> to vector<16x8xf32>
    %103 = vector.extract_strided_slice %37 {offsets = [0, 80], sizes = [16, 8], strides = [1, 1]} : vector<16x96xf32> to vector<16x8xf32>
    %104 = vector.shape_cast %101 : vector<16x8xf32> to vector<2x8x8xf32>
    %105 = vector.shape_cast %102 : vector<16x8xf32> to vector<2x8x8xf32>
    %106 = vector.shape_cast %103 : vector<16x8xf32> to vector<2x8x8xf32>
    "tpu.trace_start"() <{level = 10 : i32, message = "bqd,bkd->bqk"}> : () -> ()
    %cst_37 = arith.constant dense<0.000000e+00> : vector<2x8x8xf32>
    %107 = tpu.matmul %104, %105, %cst_37 {dimension_numbers = #tpu.dot_dimension_numbers<[2], [2], [1], [1], [0, 0, 0, 1, 1, 1], [0], [0]>} : vector<2x8x8xf32>, vector<2x8x8xf32>, vector<2x8x8xf32> -> vector<2x8x8xf32>
    "tpu.trace_stop"() : () -> ()
    %cst_38 = arith.constant 0.353553385 : f32
    %108 = vector.broadcast %cst_38 : f32 to vector<2x8x8xf32>
    %109 = arith.mulf %107, %108 : vector<2x8x8xf32>
    %110 = vector.broadcast %45 : vector<1x1x8xf32> to vector<2x8x8xf32>
    %111 = arith.addf %109, %110 : vector<2x8x8xf32>
    %cst_39 = arith.constant dense<0xFF800000> : vector<2x8xf32>
    %112 = vector.multi_reduction <maximumf>, %111, %cst_39 [2] : vector<2x8x8xf32> to vector<2x8xf32>
    %113 = vector.shape_cast %112 : vector<2x8xf32> to vector<2x8x1xf32>
    %114 = vector.broadcast %113 : vector<2x8x1xf32> to vector<2x8x8xf32>
    %115 = arith.subf %111, %114 : vector<2x8x8xf32>
    %116 = math.exp %115 : vector<2x8x8xf32>
    %cst_40 = arith.constant dense<0.000000e+00> : vector<2x8xf32>
    %117 = vector.multi_reduction <add>, %116, %cst_40 [2] : vector<2x8x8xf32> to vector<2x8xf32>
    %118 = vector.shape_cast %117 : vector<2x8xf32> to vector<2x8x1xf32>
    %119 = tpu.reciprocal %118 {approx = true} : vector<2x8x1xf32> -> vector<2x8x1xf32>
    %120 = vector.broadcast %119 : vector<2x8x1xf32> to vector<2x8x8xf32>
    %121 = arith.mulf %116, %120 : vector<2x8x8xf32>
    "tpu.trace_start"() <{level = 10 : i32, message = "bqk,bkd->bqd"}> : () -> ()
    %cst_41 = arith.constant dense<0.000000e+00> : vector<2x8x8xf32>
    %122 = tpu.matmul %121, %106, %cst_41 {dimension_numbers = #tpu.dot_dimension_numbers<[2], [1], [1], [2], [0, 0, 0, 1, 1, 2], [0], [0]>} : vector<2x8x8xf32>, vector<2x8x8xf32>, vector<2x8x8xf32> -> vector<2x8x8xf32>
    "tpu.trace_stop"() : () -> ()
    %123 = vector.shape_cast %122 : vector<2x8x8xf32> to vector<16x8xf32>
    %124 = arith.truncf %123 : vector<16x8xf32> to vector<16x8xbf16>
    %125 = vector.extract_strided_slice %39 {offsets = [16, 0], sizes = [8, 32], strides = [1, 1]} : vector<32x32xbf16> to vector<8x32xbf16>
    %cst_42 = arith.constant dense<0.000000e+00> : vector<16x32xf32>
    %126 = tpu.matmul %124, %125, %cst_42 {dimension_numbers = #tpu.dot_dimension_numbers<[1], [0], [0], [1], [0, 0, 1, 1], [], []>} : vector<16x8xbf16>, vector<8x32xbf16>, vector<16x32xf32> -> vector<16x32xf32>
    %127 = arith.addf %100, %126 : vector<16x32xf32>
    %128 = vector.extract_strided_slice %37 {offsets = [0, 24], sizes = [16, 8], strides = [1, 1]} : vector<16x96xf32> to vector<16x8xf32>
    %129 = vector.extract_strided_slice %37 {offsets = [0, 56], sizes = [16, 8], strides = [1, 1]} : vector<16x96xf32> to vector<16x8xf32>
    %130 = vector.extract_strided_slice %37 {offsets = [0, 88], sizes = [16, 8], strides = [1, 1]} : vector<16x96xf32> to vector<16x8xf32>
    %131 = vector.shape_cast %128 : vector<16x8xf32> to vector<2x8x8xf32>
    %132 = vector.shape_cast %129 : vector<16x8xf32> to vector<2x8x8xf32>
    %133 = vector.shape_cast %130 : vector<16x8xf32> to vector<2x8x8xf32>
    "tpu.trace_start"() <{level = 10 : i32, message = "bqd,bkd->bqk"}> : () -> ()
    %cst_43 = arith.constant dense<0.000000e+00> : vector<2x8x8xf32>
    %134 = tpu.matmul %131, %132, %cst_43 {dimension_numbers = #tpu.dot_dimension_numbers<[2], [2], [1], [1], [0, 0, 0, 1, 1, 1], [0], [0]>} : vector<2x8x8xf32>, vector<2x8x8xf32>, vector<2x8x8xf32> -> vector<2x8x8xf32>
    "tpu.trace_stop"() : () -> ()
    %cst_44 = arith.constant 0.353553385 : f32
    %135 = vector.broadcast %cst_44 : f32 to vector<2x8x8xf32>
    %136 = arith.mulf %134, %135 : vector<2x8x8xf32>
    %137 = vector.broadcast %45 : vector<1x1x8xf32> to vector<2x8x8xf32>
    %138 = arith.addf %136, %137 : vector<2x8x8xf32>
    %cst_45 = arith.constant dense<0xFF800000> : vector<2x8xf32>
    %139 = vector.multi_reduction <maximumf>, %138, %cst_45 [2] : vector<2x8x8xf32> to vector<2x8xf32>
    %140 = vector.shape_cast %139 : vector<2x8xf32> to vector<2x8x1xf32>
    %141 = vector.broadcast %140 : vector<2x8x1xf32> to vector<2x8x8xf32>
    %142 = arith.subf %138, %141 : vector<2x8x8xf32>
    %143 = math.exp %142 : vector<2x8x8xf32>
    %cst_46 = arith.constant dense<0.000000e+00> : vector<2x8xf32>
    %144 = vector.multi_reduction <add>, %143, %cst_46 [2] : vector<2x8x8xf32> to vector<2x8xf32>
    %145 = vector.shape_cast %144 : vector<2x8xf32> to vector<2x8x1xf32>
    %146 = tpu.reciprocal %145 {approx = true} : vector<2x8x1xf32> -> vector<2x8x1xf32>
    %147 = vector.broadcast %146 : vector<2x8x1xf32> to vector<2x8x8xf32>
    %148 = arith.mulf %143, %147 : vector<2x8x8xf32>
    "tpu.trace_start"() <{level = 10 : i32, message = "bqk,bkd->bqd"}> : () -> ()
    %cst_47 = arith.constant dense<0.000000e+00> : vector<2x8x8xf32>
    %149 = tpu.matmul %148, %133, %cst_47 {dimension_numbers = #tpu.dot_dimension_numbers<[2], [1], [1], [2], [0, 0, 0, 1, 1, 2], [0], [0]>} : vector<2x8x8xf32>, vector<2x8x8xf32>, vector<2x8x8xf32> -> vector<2x8x8xf32>
    "tpu.trace_stop"() : () -> ()
    %150 = vector.shape_cast %149 : vector<2x8x8xf32> to vector<16x8xf32>
    %151 = arith.truncf %150 : vector<16x8xf32> to vector<16x8xbf16>
    %152 = vector.extract_strided_slice %39 {offsets = [24, 0], sizes = [8, 32], strides = [1, 1]} : vector<32x32xbf16> to vector<8x32xbf16>
    %cst_48 = arith.constant dense<0.000000e+00> : vector<16x32xf32>
    %153 = tpu.matmul %151, %152, %cst_48 {dimension_numbers = #tpu.dot_dimension_numbers<[1], [0], [0], [1], [0, 0, 1, 1], [], []>} : vector<16x8xbf16>, vector<8x32xbf16>, vector<16x32xf32> -> vector<16x32xf32>
    %154 = arith.addf %127, %153 : vector<16x32xf32>
    %155 = arith.addf %3, %154 : vector<16x32xf32>
    %c0_49 = arith.constant 0 : index
    %c0_50 = arith.constant 0 : index
    %c0_51 = arith.constant 0 : index
    %156 = vector.load %arg11[%c0_49, %c0_50, %c0_51] : memref<1x1x32xf32, #tpu.memory_space<vmem>>, vector<1x1x32xf32>
    %157 = vector.shape_cast %156 : vector<1x1x32xf32> to vector<1x32xf32>
    %158 = vector.broadcast %157 : vector<1x32xf32> to vector<16x32xf32>
    %159 = arith.addf %155, %158 : vector<16x32xf32>
    %160 = arith.truncf %159 : vector<16x32xf32> to vector<16x32xbf16>
    %c0_52 = arith.constant 0 : index
    %c0_53 = arith.constant 0 : index
    %c0_54 = arith.constant 0 : index
    %161 = vector.load %arg18[%c0_52, %c0_53, %c0_54] : memref<1x32x16xbf16, #tpu.memory_space<vmem>>, vector<1x32x16xbf16>
    %162 = vector.shape_cast %161 : vector<1x32x16xbf16> to vector<32x16xbf16>
    %cst_55 = arith.constant dense<0.000000e+00> : vector<16x16xf32>
    %163 = tpu.matmul %160, %162, %cst_55 {dimension_numbers = #tpu.dot_dimension_numbers<[1], [0], [0], [1], [0, 0, 1, 1], [], []>} : vector<16x32xbf16>, vector<32x16xbf16>, vector<16x16xf32> -> vector<16x16xf32>
    %c0_56 = arith.constant 0 : index
    %c0_57 = arith.constant 0 : index
    %c0_58 = arith.constant 0 : index
    %164 = vector.load %arg19[%c0_56, %c0_57, %c0_58] : memref<1x1x16xf32, #tpu.memory_space<vmem>>, vector<1x1x16xf32>
    %165 = vector.shape_cast %164 : vector<1x1x16xf32> to vector<1x16xf32>
    %166 = vector.broadcast %165 : vector<1x16xf32> to vector<16x16xf32>
    %167 = arith.addf %163, %166 : vector<16x16xf32>
    %cst_59 = arith.constant 0.000000e+00 : f32
    %168 = vector.broadcast %cst_59 : f32 to vector<16x16xf32>
    %169 = arith.maximumf %167, %168 : vector<16x16xf32>
    %170 = arith.truncf %169 : vector<16x16xf32> to vector<16x16xbf16>
    %c0_60 = arith.constant 0 : index
    %c0_61 = arith.constant 0 : index
    %c0_62 = arith.constant 0 : index
    %171 = vector.load %arg20[%c0_60, %c0_61, %c0_62] : memref<1x16x32xbf16, #tpu.memory_space<vmem>>, vector<1x16x32xbf16>
    %172 = vector.shape_cast %171 : vector<1x16x32xbf16> to vector<16x32xbf16>
    %cst_63 = arith.constant dense<0.000000e+00> : vector<16x32xf32>
    %173 = tpu.matmul %170, %172, %cst_63 {dimension_numbers = #tpu.dot_dimension_numbers<[1], [0], [0], [1], [0, 0, 1, 1], [], []>} : vector<16x16xbf16>, vector<16x32xbf16>, vector<16x32xf32> -> vector<16x32xf32>
    %c0_64 = arith.constant 0 : index
    %c0_65 = arith.constant 0 : index
    %c0_66 = arith.constant 0 : index
    %174 = vector.load %arg21[%c0_64, %c0_65, %c0_66] : memref<1x1x32xf32, #tpu.memory_space<vmem>>, vector<1x1x32xf32>
    %175 = vector.shape_cast %174 : vector<1x1x32xf32> to vector<1x32xf32>
    %176 = vector.broadcast %175 : vector<1x32xf32> to vector<16x32xf32>
    %177 = arith.addf %173, %176 : vector<16x32xf32>
    %cst_67 = arith.constant 1.000000e-01 : f32
    %178 = vector.broadcast %cst_67 : f32 to vector<16x32xf32>
    %179 = arith.mulf %177, %178 : vector<16x32xf32>
    %c0_68 = arith.constant 0 : index
    %c0_69 = arith.constant 0 : index
    %c0_70 = arith.constant 0 : index
    %180 = vector.load %arg12[%c0_68, %c0_69, %c0_70] : memref<1x1x32xf32, #tpu.memory_space<vmem>>, vector<1x1x32xf32>
    %181 = vector.shape_cast %180 : vector<1x1x32xf32> to vector<1x32xf32>
    %c0_71 = arith.constant 0 : index
    %c0_72 = arith.constant 0 : index
    %c0_73 = arith.constant 0 : index
    %182 = vector.load %arg13[%c0_71, %c0_72, %c0_73] : memref<1x1x32xf32, #tpu.memory_space<vmem>>, vector<1x1x32xf32>
    %183 = vector.shape_cast %182 : vector<1x1x32xf32> to vector<1x32xf32>
    %cst_74 = arith.constant dense<0.000000e+00> : vector<16xf32>
    %184 = vector.multi_reduction <add>, %159, %cst_74 [1] : vector<16x32xf32> to vector<16xf32>
    %185 = vector.shape_cast %184 : vector<16xf32> to vector<16x1xf32>
    %cst_75 = arith.constant 3.200000e+01 : f32
    %186 = vector.broadcast %cst_75 : f32 to vector<16x1xf32>
    %187 = arith.divf %185, %186 : vector<16x1xf32>
    %188 = vector.broadcast %187 : vector<16x1xf32> to vector<16x32xf32>
    %189 = arith.subf %159, %188 : vector<16x32xf32>
    %190 = arith.mulf %189, %189 : vector<16x32xf32>
    %cst_76 = arith.constant dense<0.000000e+00> : vector<16xf32>
    %191 = vector.multi_reduction <add>, %190, %cst_76 [1] : vector<16x32xf32> to vector<16xf32>
    %192 = vector.shape_cast %191 : vector<16xf32> to vector<16x1xf32>
    %cst_77 = arith.constant 3.200000e+01 : f32
    %193 = vector.broadcast %cst_77 : f32 to vector<16x1xf32>
    %194 = arith.divf %192, %193 : vector<16x1xf32>
    %195 = vector.broadcast %187 : vector<16x1xf32> to vector<16x32xf32>
    %196 = arith.subf %159, %195 : vector<16x32xf32>
    %cst_78 = arith.constant 9.99999997E-7 : f32
    %197 = vector.broadcast %cst_78 : f32 to vector<16x1xf32>
    %198 = arith.addf %194, %197 : vector<16x1xf32>
    %199 = math.rsqrt %198 : vector<16x1xf32>
    %200 = vector.broadcast %199 : vector<16x1xf32> to vector<16x32xf32>
    %201 = arith.mulf %196, %200 : vector<16x32xf32>
    %202 = vector.broadcast %181 : vector<1x32xf32> to vector<16x32xf32>
    %203 = arith.mulf %201, %202 : vector<16x32xf32>
    %204 = vector.broadcast %183 : vector<1x32xf32> to vector<16x32xf32>
    %205 = arith.addf %203, %204 : vector<16x32xf32>
    %206 = arith.truncf %205 : vector<16x32xf32> to vector<16x32xbf16>
    %c0_79 = arith.constant 0 : index
    %c0_80 = arith.constant 0 : index
    %c0_81 = arith.constant 0 : index
    %207 = vector.load %arg14[%c0_79, %c0_80, %c0_81] : memref<1x32x128xbf16, #tpu.memory_space<vmem>>, vector<1x32x128xbf16>
    %208 = vector.shape_cast %207 : vector<1x32x128xbf16> to vector<32x128xbf16>
    %cst_82 = arith.constant dense<0.000000e+00> : vector<16x128xf32>
    %209 = tpu.matmul %206, %208, %cst_82 {dimension_numbers = #tpu.dot_dimension_numbers<[1], [0], [0], [1], [0, 0, 1, 1], [], []>} : vector<16x32xbf16>, vector<32x128xbf16>, vector<16x128xf32> -> vector<16x128xf32>
    %c0_83 = arith.constant 0 : index
    %c0_84 = arith.constant 0 : index
    %c0_85 = arith.constant 0 : index
    %210 = vector.load %arg15[%c0_83, %c0_84, %c0_85] : memref<1x1x128xf32, #tpu.memory_space<vmem>>, vector<1x1x128xf32>
    %211 = vector.shape_cast %210 : vector<1x1x128xf32> to vector<1x128xf32>
    %212 = vector.broadcast %211 : vector<1x128xf32> to vector<16x128xf32>
    %213 = arith.addf %209, %212 : vector<16x128xf32>
    %214 = arith.mulf %213, %213 : vector<16x128xf32>
    %215 = arith.mulf %213, %214 : vector<16x128xf32>
    %cst_86 = arith.constant 4.471500e-02 : f32
    %216 = vector.broadcast %cst_86 : f32 to vector<16x128xf32>
    %217 = arith.mulf %216, %215 : vector<16x128xf32>
    %218 = arith.addf %213, %217 : vector<16x128xf32>
    %cst_87 = arith.constant 0.797884583 : f32
    %219 = vector.broadcast %cst_87 : f32 to vector<16x128xf32>
    %220 = arith.mulf %219, %218 : vector<16x128xf32>
    %221 = math.tanh %220 : vector<16x128xf32>
    %cst_88 = arith.constant 1.000000e+00 : f32
    %222 = vector.broadcast %cst_88 : f32 to vector<16x128xf32>
    %223 = arith.addf %222, %221 : vector<16x128xf32>
    %cst_89 = arith.constant 5.000000e-01 : f32
    %224 = vector.broadcast %cst_89 : f32 to vector<16x128xf32>
    %225 = arith.mulf %224, %223 : vector<16x128xf32>
    %226 = arith.mulf %213, %225 : vector<16x128xf32>
    %227 = arith.truncf %226 : vector<16x128xf32> to vector<16x128xbf16>
    %c0_90 = arith.constant 0 : index
    %c0_91 = arith.constant 0 : index
    %c0_92 = arith.constant 0 : index
    %228 = vector.load %arg16[%c0_90, %c0_91, %c0_92] : memref<1x128x32xbf16, #tpu.memory_space<vmem>>, vector<1x128x32xbf16>
    %229 = vector.shape_cast %228 : vector<1x128x32xbf16> to vector<128x32xbf16>
    %cst_93 = arith.constant dense<0.000000e+00> : vector<16x32xf32>
    %230 = tpu.matmul %227, %229, %cst_93 {dimension_numbers = #tpu.dot_dimension_numbers<[1], [0], [0], [1], [0, 0, 1, 1], [], []>} : vector<16x128xbf16>, vector<128x32xbf16>, vector<16x32xf32> -> vector<16x32xf32>
    %c0_94 = arith.constant 0 : index
    %c0_95 = arith.constant 0 : index
    %c0_96 = arith.constant 0 : index
    %231 = vector.load %arg17[%c0_94, %c0_95, %c0_96] : memref<1x1x32xf32, #tpu.memory_space<vmem>>, vector<1x1x32xf32>
    %232 = vector.shape_cast %231 : vector<1x1x32xf32> to vector<1x32xf32>
    %233 = vector.broadcast %232 : vector<1x32xf32> to vector<16x32xf32>
    %234 = arith.addf %230, %233 : vector<16x32xf32>
    %235 = arith.addf %159, %234 : vector<16x32xf32>
    %236 = arith.addf %235, %179 : vector<16x32xf32>
    %c0_97 = arith.constant 0 : index
    %c0_98 = arith.constant 0 : index
    %237 = vector.load %arg28[%c0_97, %c0_98] : memref<16x32xf32, #tpu.memory_space<vmem>>, vector<16x32xf32>
    tpu.vector_store %arg28[%c0_97, %c0_98], %236 {strides = array<i32>} : memref<16x32xf32, #tpu.memory_space<vmem>>, vector<16x32xf32>,
    %c1_i32 = arith.constant 1 : i32
    %238 = arith.cmpi eq, %arg0, %c1_i32 : i32
    %239 = arith.extui %238 : i1 to i32
    %c0_i32_99 = arith.constant 0 : i32
    %240 = arith.cmpi ne, %239, %c0_i32_99 : i32
    scf.if %240 {
      %241 = vector.shape_cast %236 : vector<16x32xf32> to vector<2x8x32xf32>
      %242 = vector.extract_strided_slice %241 {offsets = [0, 0, 0], sizes = [2, 1, 32], strides = [1, 1, 1]} : vector<2x8x32xf32> to vector<2x1x32xf32>
      %243 = vector.shape_cast %242 : vector<2x1x32xf32> to vector<2x32xf32>
      %c0_100 = arith.constant 0 : index
      %c0_101 = arith.constant 0 : index
      %244 = vector.load %arg22[%c0_100, %c0_101] : memref<1x32xf32, #tpu.memory_space<vmem>>, vector<1x32xf32>
      %c0_102 = arith.constant 0 : index
      %c0_103 = arith.constant 0 : index
      %245 = vector.load %arg23[%c0_102, %c0_103] : memref<1x32xf32, #tpu.memory_space<vmem>>, vector<1x32xf32>
      %cst_104 = arith.constant dense<0.000000e+00> : vector<2xf32>
      %246 = vector.multi_reduction <add>, %243, %cst_104 [1] : vector<2x32xf32> to vector<2xf32>
      %247 = vector.shape_cast %246 : vector<2xf32> to vector<2x1xf32>
      %cst_105 = arith.constant 3.200000e+01 : f32
      %248 = vector.broadcast %cst_105 : f32 to vector<2x1xf32>
      %249 = arith.divf %247, %248 : vector<2x1xf32>
      %250 = vector.broadcast %249 : vector<2x1xf32> to vector<2x32xf32>
      %251 = arith.subf %243, %250 : vector<2x32xf32>
      %252 = arith.mulf %251, %251 : vector<2x32xf32>
      %cst_106 = arith.constant dense<0.000000e+00> : vector<2xf32>
      %253 = vector.multi_reduction <add>, %252, %cst_106 [1] : vector<2x32xf32> to vector<2xf32>
      %254 = vector.shape_cast %253 : vector<2xf32> to vector<2x1xf32>
      %cst_107 = arith.constant 3.200000e+01 : f32
      %255 = vector.broadcast %cst_107 : f32 to vector<2x1xf32>
      %256 = arith.divf %254, %255 : vector<2x1xf32>
      %257 = vector.broadcast %249 : vector<2x1xf32> to vector<2x32xf32>
      %258 = arith.subf %243, %257 : vector<2x32xf32>
      %cst_108 = arith.constant 9.99999997E-7 : f32
      %259 = vector.broadcast %cst_108 : f32 to vector<2x1xf32>
      %260 = arith.addf %256, %259 : vector<2x1xf32>
      %261 = math.rsqrt %260 : vector<2x1xf32>
      %262 = vector.broadcast %261 : vector<2x1xf32> to vector<2x32xf32>
      %263 = arith.mulf %258, %262 : vector<2x32xf32>
      %264 = vector.broadcast %244 : vector<1x32xf32> to vector<2x32xf32>
      %265 = arith.mulf %263, %264 : vector<2x32xf32>
      %266 = vector.broadcast %245 : vector<1x32xf32> to vector<2x32xf32>
      %267 = arith.addf %265, %266 : vector<2x32xf32>
      %c0_109 = arith.constant 0 : index
      %c0_110 = arith.constant 0 : index
      %268 = vector.load %arg27[%c0_109, %c0_110] : memref<2x32xf32, #tpu.memory_space<vmem>>, vector<2x32xf32>
      tpu.vector_store %arg27[%c0_109, %c0_110], %267 {strides = array<i32>} : memref<2x32xf32, #tpu.memory_space<vmem>>, vector<2x32xf32>,
      %269 = arith.mulf %267, %267 : vector<2x32xf32>
      %cst_111 = arith.constant dense<0.000000e+00> : vector<2xf32>
      %270 = vector.multi_reduction <add>, %269, %cst_111 [1] : vector<2x32xf32> to vector<2xf32>
      %271 = vector.shape_cast %270 : vector<2xf32> to vector<2x1xf32>
      %cst_112 = arith.constant 1.000000e-24 : f32
      %272 = vector.broadcast %cst_112 : f32 to vector<2x1xf32>
      %273 = arith.maximumf %271, %272 : vector<2x1xf32>
      %274 = math.rsqrt %273 : vector<2x1xf32>
      %275 = vector.broadcast %274 : vector<2x1xf32> to vector<2x32xf32>
      %276 = arith.mulf %267, %275 : vector<2x32xf32>
      %c0_113 = arith.constant 0 : index
      %c0_114 = arith.constant 0 : index
      %277 = vector.load %arg24[%c0_113, %c0_114] : memref<10x32xf32, #tpu.memory_space<vmem>>, vector<10x32xf32>
      %278 = arith.mulf %277, %277 : vector<10x32xf32>
      %cst_115 = arith.constant dense<0.000000e+00> : vector<10xf32>
      %279 = vector.multi_reduction <add>, %278, %cst_115 [1] : vector<10x32xf32> to vector<10xf32>
      %280 = vector.shape_cast %279 : vector<10xf32> to vector<10x1xf32>
      %cst_116 = arith.constant 1.000000e-24 : f32
      %281 = vector.broadcast %cst_116 : f32 to vector<10x1xf32>
      %282 = arith.maximumf %280, %281 : vector<10x1xf32>
      %283 = math.rsqrt %282 : vector<10x1xf32>
      %284 = vector.broadcast %283 : vector<10x1xf32> to vector<10x32xf32>
      %285 = arith.mulf %277, %284 : vector<10x32xf32>
      %cst_117 = arith.constant dense<0.000000e+00> : vector<2x10xf32>
      %286 = tpu.matmul %276, %285, %cst_117 {dimension_numbers = #tpu.dot_dimension_numbers<[1], [1], [0], [0], [0, 0, 1, 0], [], []>} : vector<2x32xf32>, vector<10x32xf32>, vector<2x10xf32> -> vector<2x10xf32>
      %c0_118 = arith.constant 0 : index
      %c0_119 = arith.constant 0 : index
      %287 = vector.load %arg25[%c0_118, %c0_119] : memref<1x1xf32, #tpu.memory_space<vmem>>, vector<1x1xf32>
      %288 = vector.broadcast %287 : vector<1x1xf32> to vector<2x10xf32>
      %289 = arith.mulf %286, %288 : vector<2x10xf32>
      %c0_120 = arith.constant 0 : index
      %c0_121 = arith.constant 0 : index
      %290 = vector.load %arg26[%c0_120, %c0_121] : memref<2x10xf32, #tpu.memory_space<vmem>>, vector<2x10xf32>
      tpu.vector_store %arg26[%c0_120, %c0_121], %289 {strides = array<i32>} : memref<2x10xf32, #tpu.memory_space<vmem>>, vector<2x10xf32>,
    } else {
    }
    return
  }
  func.func @transform_0(%arg0: i32) -> (i32, i32) {
    %c0_i32 = arith.constant 0 : i32
    %c0_i32_0 = arith.constant 0 : i32
    %c0_i32_1 = arith.constant 0 : i32
    return %c0_i32, %c0_i32_0 : i32, i32
  }
  func.func @transform_1(%arg0: i32) -> (i32, i32) {
    %c0_i32 = arith.constant 0 : i32
    %c0_i32_0 = arith.constant 0 : i32
    %c0_i32_1 = arith.constant 0 : i32
    return %c0_i32, %c0_i32_0 : i32, i32
  }
  func.func @transform_2(%arg0: i32) -> (i32, i32) {
    %c0_i32 = arith.constant 0 : i32
    %c0_i32_0 = arith.constant 0 : i32
    %c0_i32_1 = arith.constant 0 : i32
    return %c0_i32, %c0_i32_0 : i32, i32
  }
  func.func @transform_3(%arg0: i32) -> (i32, i32) {
    %c0_i32 = arith.constant 0 : i32
    %c0_i32_0 = arith.constant 0 : i32
    %c0_i32_1 = arith.constant 0 : i32
    return %c0_i32, %c0_i32_0 : i32, i32
  }
  func.func @transform_4(%arg0: i32) -> (i32, i32) {
    %c0_i32 = arith.constant 0 : i32
    %c0_i32_0 = arith.constant 0 : i32
    %c0_i32_1 = arith.constant 0 : i32
    return %c0_i32, %c0_i32_0 : i32, i32
  }
  func.func @transform_5(%arg0: i32) -> (i32, i32, i32) {
    %c0_i32 = arith.constant 0 : i32
    %c0_i32_0 = arith.constant 0 : i32
    %c0_i32_1 = arith.constant 0 : i32
    return %arg0, %c0_i32, %c0_i32_0 : i32, i32, i32
  }
  func.func @transform_6(%arg0: i32) -> (i32, i32, i32) {
    %c0_i32 = arith.constant 0 : i32
    %c0_i32_0 = arith.constant 0 : i32
    %c0_i32_1 = arith.constant 0 : i32
    return %arg0, %c0_i32, %c0_i32_0 : i32, i32, i32
  }
  func.func @transform_7(%arg0: i32) -> (i32, i32, i32) {
    %c0_i32 = arith.constant 0 : i32
    %c0_i32_0 = arith.constant 0 : i32
    %c0_i32_1 = arith.constant 0 : i32
    return %arg0, %c0_i32, %c0_i32_0 : i32, i32, i32
  }
  func.func @transform_8(%arg0: i32) -> (i32, i32, i32) {
    %c0_i32 = arith.constant 0 : i32
    %c0_i32_0 = arith.constant 0 : i32
    %c0_i32_1 = arith.constant 0 : i32
    return %arg0, %c0_i32, %c0_i32_0 : i32, i32, i32
  }
  func.func @transform_9(%arg0: i32) -> (i32, i32, i32) {
    %c0_i32 = arith.constant 0 : i32
    %c0_i32_0 = arith.constant 0 : i32
    %c0_i32_1 = arith.constant 0 : i32
    return %arg0, %c0_i32, %c0_i32_0 : i32, i32, i32
  }
  func.func @transform_10(%arg0: i32) -> (i32, i32, i32) {
    %c0_i32 = arith.constant 0 : i32
    %c0_i32_0 = arith.constant 0 : i32
    %c0_i32_1 = arith.constant 0 : i32
    return %arg0, %c0_i32, %c0_i32_0 : i32, i32, i32
  }
  func.func @transform_11(%arg0: i32) -> (i32, i32, i32) {
    %c0_i32 = arith.constant 0 : i32
    %c0_i32_0 = arith.constant 0 : i32
    %c0_i32_1 = arith.constant 0 : i32
    return %arg0, %c0_i32, %c0_i32_0 : i32, i32, i32
  }
  func.func @transform_12(%arg0: i32) -> (i32, i32, i32) {
    %c0_i32 = arith.constant 0 : i32
    %c0_i32_0 = arith.constant 0 : i32
    %c0_i32_1 = arith.constant 0 : i32
    return %arg0, %c0_i32, %c0_i32_0 : i32, i32, i32
  }
  func.func @transform_13(%arg0: i32) -> (i32, i32, i32) {
    %c0_i32 = arith.constant 0 : i32
    %c0_i32_0 = arith.constant 0 : i32
    %c0_i32_1 = arith.constant 0 : i32
    return %arg0, %c0_i32, %c0_i32_0 : i32, i32, i32
  }
  func.func @transform_14(%arg0: i32) -> (i32, i32, i32) {
    %c0_i32 = arith.constant 0 : i32
    %c0_i32_0 = arith.constant 0 : i32
    %c0_i32_1 = arith.constant 0 : i32
    return %arg0, %c0_i32, %c0_i32_0 : i32, i32, i32
  }
  func.func @transform_15(%arg0: i32) -> (i32, i32, i32) {
    %c0_i32 = arith.constant 0 : i32
    %c0_i32_0 = arith.constant 0 : i32
    %c0_i32_1 = arith.constant 0 : i32
    return %arg0, %c0_i32, %c0_i32_0 : i32, i32, i32
  }
  func.func @transform_16(%arg0: i32) -> (i32, i32, i32) {
    %c0_i32 = arith.constant 0 : i32
    %c0_i32_0 = arith.constant 0 : i32
    %c0_i32_1 = arith.constant 0 : i32
    return %arg0, %c0_i32, %c0_i32_0 : i32, i32, i32
  }
  func.func @transform_17(%arg0: i32) -> (i32, i32, i32) {
    %c0_i32 = arith.constant 0 : i32
    %c0_i32_0 = arith.constant 0 : i32
    %c0_i32_1 = arith.constant 0 : i32
    return %arg0, %c0_i32, %c0_i32_0 : i32, i32, i32
  }
  func.func @transform_18(%arg0: i32) -> (i32, i32, i32) {
    %c0_i32 = arith.constant 0 : i32
    %c0_i32_0 = arith.constant 0 : i32
    %c0_i32_1 = arith.constant 0 : i32
    return %arg0, %c0_i32, %c0_i32_0 : i32, i32, i32
  }
  func.func @transform_19(%arg0: i32) -> (i32, i32, i32) {
    %c0_i32 = arith.constant 0 : i32
    %c0_i32_0 = arith.constant 0 : i32
    %c0_i32_1 = arith.constant 0 : i32
    return %arg0, %c0_i32, %c0_i32_0 : i32, i32, i32
  }
  func.func @transform_20(%arg0: i32) -> (i32, i32, i32) {
    %c0_i32 = arith.constant 0 : i32
    %c0_i32_0 = arith.constant 0 : i32
    %c0_i32_1 = arith.constant 0 : i32
    return %arg0, %c0_i32, %c0_i32_0 : i32, i32, i32
  }
  func.func @transform_21(%arg0: i32) -> (i32, i32) {
    %c0_i32 = arith.constant 0 : i32
    %c0_i32_0 = arith.constant 0 : i32
    %c0_i32_1 = arith.constant 0 : i32
    return %c0_i32, %c0_i32_0 : i32, i32
  }
  func.func @transform_22(%arg0: i32) -> (i32, i32) {
    %c0_i32 = arith.constant 0 : i32
    %c0_i32_0 = arith.constant 0 : i32
    %c0_i32_1 = arith.constant 0 : i32
    return %c0_i32, %c0_i32_0 : i32, i32
  }
  func.func @transform_23(%arg0: i32) -> (i32, i32) {
    %c0_i32 = arith.constant 0 : i32
    %c0_i32_0 = arith.constant 0 : i32
    %c0_i32_1 = arith.constant 0 : i32
    return %c0_i32, %c0_i32_0 : i32, i32
  }
  func.func @transform_24(%arg0: i32) -> (i32, i32) {
    %c0_i32 = arith.constant 0 : i32
    %c0_i32_0 = arith.constant 0 : i32
    %c0_i32_1 = arith.constant 0 : i32
    return %c0_i32, %c0_i32_0 : i32, i32
  }
  func.func @transform_25(%arg0: i32) -> (i32, i32) {
    %c0_i32 = arith.constant 0 : i32
    %c0_i32_0 = arith.constant 0 : i32
    %c0_i32_1 = arith.constant 0 : i32
    return %c0_i32, %c0_i32_0 : i32, i32
  }
  func.func @transform_26(%arg0: i32) -> (i32, i32) {
    %c0_i32 = arith.constant 0 : i32
    %c0_i32_0 = arith.constant 0 : i32
    %c0_i32_1 = arith.constant 0 : i32
    return %c0_i32, %c0_i32_0 : i32, i32
  }
}

</mosaic_0001>

<bundles_post_ra>
// kernel: ease_forward.1
= control target key start
LH: loop header
LB: loop body
LE: loop exit
PB: predicated region body
PF: predicated region fallthrough
CT: control target
= control target key end

     0   :  { %s4840_s0 = inlined_call_operand.vmem [shape: bf16[16,192], index: 0, kind: input, shape index: {}]   ;;  %s4841_s1 = inlined_call_operand.vmem [shape: bf16[192,32], index: 1, kind: input, shape index: {}]   ;;  %s4842_s2 = inlined_call_operand.vmem [shape: f32[1,32], index: 2, kind: input, shape index: {}, may-alias: {2,22}]   ;;  %s4843_s3 = inlined_call_operand.vmem [shape: f32[1,32], index: 3, kind: input, shape index: {}]   ;;  %s4844_s4 = inlined_call_operand.vmem [shape: f32[8,32], index: 4, kind: input, shape index: {}]   ;;  %s4845_s5 = inlined_call_operand.vmem [shape: f32[2,1,32], index: 5, kind: input, shape index: {}, may-alias: {5,11}]   ;;  %s4846_s6 = inlined_call_operand.vmem [shape: f32[2,1,32], index: 6, kind: input, shape index: {}, may-alias: {6,10,12,16,20}]   ;;  %s4847_s7 = inlined_call_operand.vmem [shape: bf16[2,32,96], index: 7, kind: input, shape index: {}]   ;;  %s4848_s8 = inlined_call_operand.vmem [shape: f32[2,1,96], index: 8, kind: input, shape index: {}]   ;;  %s4849_s9 = inlined_call_operand.vmem [shape: bf16[2,32,32], index: 9, kind: input, shape index: {}]   ;;  %s4850_s10 = inlined_call_operand.vmem [shape: f32[2,1,32], index: 10, kind: input, shape index: {}, may-alias: {6,10,12,16,20}]   ;;  %s4851_s11 = inlined_call_operand.vmem [shape: f32[2,1,32], index: 11, kind: input, shape index: {}, may-alias: {5,11}]   ;;  %s4852_s12 = inlined_call_operand.vmem [shape: f32[2,1,32], index: 12, kind: input, shape index: {}, may-alias: {6,10,12,16,20}]   ;;  %s4853_s13 = inlined_call_operand.vmem [shape: bf16[2,32,128], index: 13, kind: input, shape index: {}]   ;;  %s4854_s14 = inlined_call_operand.vmem [shape: f32[2,1,128], index: 14, kind: input, shape index: {}]   ;;  %s4855_s15 = inlined_call_operand.vmem [shape: bf16[2,128,32], index: 15, kind: input, shape index: {}]   ;;  %s4856_s16 = inlined_call_operand.vmem [shape: f32[2,1,32], index: 16, kind: input, shape index: {}, may-alias: {6,10,12,16,20}]   ;;  %s4857_s17 = inlined_call_operand.vmem [shape: bf16[2,32,16], index: 17, kind: input, shape index: {}]   ;;  %s4858_s18 = inlined_call_operand.vmem [shape: f32[2,1,16], index: 18, kind: input, shape index: {}]   ;;  %s4859_s19 = inlined_call_operand.vmem [shape: bf16[2,16,32], index: 19, kind: input, shape index: {}]   ;;  %s4860_s20 = inlined_call_operand.vmem [shape: f32[2,1,32], index: 20, kind: input, shape index: {}, may-alias: {6,10,12,16,20}]   ;;  %s4861_s21 = inlined_call_operand.vmem [shape: f32[1,32], index: 21, kind: input, shape index: {}]   ;;  %s4862_s22 = inlined_call_operand.vmem [shape: f32[1,32], index: 22, kind: input, shape index: {}, may-alias: {2,22}]   ;;  %s4863_s23 = inlined_call_operand.vmem [shape: f32[10,32], index: 23, kind: input, shape index: {}]   ;;  %s4864_s24 = inlined_call_operand.<no memory space> [shape: f32[1,1], index: 24, kind: input, shape index: {}]   ;;  %s4865_s25 = inlined_call_operand.hbm [shape: f32[2,10], index: 25, kind: output, shape index: {0}]   ;;  %s4866_s26 = inlined_call_operand.hbm [shape: f32[2,32], index: 26, kind: output, shape index: {1}]  }
   0x1   :  { %4874 = sst [smem:[#allocation12_spill]] %s4840_s0  ;;  %v32_v0 = vstv %s4864_s24 }
   0x2   :  { %4875 = sst [smem:[#allocation13_spill]] %s4841_s1  ;;  %33 = vst [vmem:[#allocation3] sm:$0x1] %v32_v0 }
   0x3   :  { %4876 = sst [smem:[#allocation14_spill]] %s4842_s2 }
   0x4   :  { %4877 = sst [smem:[#allocation15_spill]] %s4843_s3 }
   0x5   :  { %4878 = sst [smem:[#allocation16_spill]] %s4844_s4 }
   0x6   :  { %4879 = sst [smem:[#allocation17_spill]] %s4845_s5 }
   0x7   :  { %4880 = sst [smem:[#allocation18_spill]] %s4846_s6 }
   0x8   :  { %4881 = sst [smem:[#allocation19_spill]] %s4847_s7 }
   0x9   :  { %4882 = sst [smem:[#allocation20_spill]] %s4848_s8 }
   0xa   :  { %4883 = sst [smem:[#allocation21_spill]] %s4849_s9 }
   0xb   :  { %4884 = sst [smem:[#allocation22_spill]] %s4850_s10 }
   0xc   :  { %4885 = sst [smem:[#allocation23_spill]] %s4853_s13 }
   0xd   :  { %4886 = sst [smem:[#allocation24_spill]] %s4861_s21 }
   0xe   :  { %4887 = sst [smem:[#allocation25_spill]] %s4862_s22 }
   0xf   :  { %4888 = sst [smem:[#allocation26_spill]] %s4863_s23 }
  0x10   :  { %4889 = sst [smem:[#allocation27_spill]] %s4865_s25 }
  0x11   :  { %4890 = sst [smem:[#allocation28_spill]] %s4866_s26 }
  0x12   :  { %34 = vsyncpa [#allocation5], 0 }
  0x13   :  { %35 = vsyncpa [#allocation7], 0  ;;  %s4349_s7 = smov 0  }
  0x14 LB: > { %4891 = sst [smem:[#allocation10_spill]] %s4189_s7  ;;  %s4355_s28 = sadd.s32 4294967295, %s4189_s7   ;;  %s4189_s7 = sphi %s4349_s7, %s41_s7  }
  0x15   : > { %4892 = sst [smem:[#allocation11_spill]] %s4355_s28  ;;  %p3673_p0 = scmp.ge.s32.totalorder %s4189_s7, 1 }
  0x16   : > { %p839_p1 = scmp.lt.s32.totalorder %s4189_s7, 3 }
  0x18   : > { %p840_p2 = pnand %p3673_p0, %p839_p1 }
  0x19   : > { %p959_p3 = scmp.lt.s32.totalorder (!%p840_p2), %s4355_s28, 1  ;;  %s4896_s7 = sld [smem:[#allocation19_spill]] (!%p840_p2) }
  0x1a   : > { %843 = sbr.rel (%p840_p2) target bundleno = 5051 (0x13bb), region = 120  ;;  %s4897_s21 = sld [smem:[#allocation21_spill]] (!%p840_p2) }
  0x1b   : > { %s4899_s13 = sld [smem:[#allocation23_spill]] (!%p840_p2) }
  0x1c   : > { %s4900_s23 = sld [smem:[#allocation11_spill]] (!%p840_p2) }
  0x1f   : > { %s4361_s24 = scalar_select %p959_p3, %s4355_s28, 1 }
  0x21   : > { %s3773_s10 = sshll.u32 %s4361_s24, 4  ;;  %s3776_s3 = sshll.u32 %s4361_s24, 6 }
  0x22   : > { %s4379_s26 = scalar_lea.vmem %s4896_s7, %s3773_s10  ;;  %s4384_s29 = scalar_lea.vmem %s4897_s21, %s3773_s10 }
  0x23   : > { %s4401_s4 = scalar_lea.vmem %s4899_s13, %s3773_s10  ;;  %s4411_s30 = scalar_lea.vmem %s4855_s15, %s3776_s3 }
  0x24   : > { %s4420_s8 = scalar_lea.vmem %s4857_s17, %s3773_s10  ;;  %s1010_s22 = scalar_lea.vmem %s4858_s18, %s4361_s24 }
  0x25   : > { %s3778_s21 = sshll.u32 %s4361_s24, 3  ;;  %s1018_s0 = scalar_lea.vmem %s4860_s20, %s4361_s24 }
  0x26   : > { %s4434_s13 = scalar_lea.vmem %s4859_s19, %s3778_s21  ;;  %p3686_p4 = scmp.ne.s32.totalorder %s4900_s23, 0 }
  0x27   : > { %s4901_s5 = sld [smem:[#allocation13_spill]] (!%p3686_p4) }
  0x28   : > { %1023 = sbr.rel (%p3686_p4) target bundleno = 298 (0x12a), region = 124  ;;  %s4902_s23 = sld [smem:[#allocation12_spill]] (!%p3686_p4) }
  0x29   : > { %s4903_s27 = sld [smem:[#allocation15_spill]] (!%p3686_p4) }
  0x2a   : > { %s4904_s1 = sld [smem:[#allocation16_spill]] (!%p3686_p4) }
  0x2b   : > { %s4905_s25 = sld [smem:[#allocation14_spill]] (!%p3686_p4) }
  0x2d   : > { %v4043_v1 = vld [vmem:[%s4901_s5 + $0x38] sm:$0xff]   ;;  %v4191_v2 = vmov 0   ;;  %v4044_v3 = vld [vmem:[%s4901_s5 + $0x30] sm:$0xff]   ;;  %v4045_v4 = vld [vmem:[%s4901_s5 + $0x28] sm:$0xff]   ;;  %vm1138_vm0 = vcmask 523264   ;;  %v1183_v16 = vlaneseq  ;;  %vm1207_vm3 = vcmask 261120  }
  0x2e   : > { %1142 = vmatprep.subr.bf16.mxu0 %v4191_v2  ;;  %v4046_v5 = vld [vmem:[%s4901_s5 + $0x20] sm:$0xff]   ;;  %v4047_v7 = vld [vmem:[%s4901_s5 + $0x18] sm:$0xff]   ;;  %v4048_v8 = vld [vmem:[%s4901_s5 + $0x10] sm:$0xff]  }
  0x2f   : > { %1143 = vmatpush1.bf16.msra.mxu0 %v4043_v1  ;;  %v4057_v6 = vld [vmem:[%s4902_s23 + $0x4] ss:$8 sps:$4 sm:$0xff]   ;;  %v4051_v11 = vld [vmem:[%s4901_s5 + $0x58] sm:$0xff]   ;;  %v4052_v12 = vld [vmem:[%s4901_s5 + $0x50] sm:$0xff]   ;;  %v1184_v17 = vshrl.u32 %v1183_v16, 7 }
  0x30   : > { %1144 = vmatprep.subr.bf16.mxu0 %v4191_v2  ;;  %3702 = vmatprep.mubr.msk.bf16.mxu0 %vm1138_vm0, %v4057_v6  ;;  %v4049_v9 = vld [vmem:[%s4901_s5 + $0x8] sm:$0xff]   ;;  %v4050_v10 = vld [vmem:[%s4901_s5] sm:$0xff]  }
  0x31   : > { %v4053_v13 = vld [vmem:[%s4901_s5 + $0x48] sm:$0xff]   ;;  %v4054_v14 = vld [vmem:[%s4901_s5 + $0x40] sm:$0xff]   ;;  %v1202_v22 = vsub.s32 0, %v1184_v17  ;;  %vm1189_vm1 = vcmp.le.s32.totalorder %v1184_v17, 4  ;;  %vm1188_vm2 = vcmp.eq.s32.totalorder %v1184_v17, 0 }
  0x32   : > { %v4055_v15 = vld [vmem:[%s4902_s23] ss:$8 sps:$4 sm:$0xff]  }
  0x33   : > { %1145 = vmatpush1.bf16.msra.mxu0 %v4044_v3  ;;  %v1185_v18 = vld [vmem:[%s4903_s27] sm:$0x1] }
  0x34   : > { %1146 = vmatprep.subr.bf16.mxu0 %v4191_v2  ;;  %v1186_v19 = vld [vmem:[%s4904_s1] sm:$0x1] }
  0x35   : > { %v3687_v20 = vld [vmem:[%s4905_s25] ss:$0 sm:$0xff]  ;;  %v1187_v21 = vadd.f32 %v1186_v19, %v1185_v18 }
  0x36   : > { %v1190_v24 = vld [vmem:[%s4904_s1] sm:$0xff] }
  0x37   : > { %1147 = vmatpush1.bf16.msra.mxu0 %v4045_v4  ;;  %v1203_v26 = vrot.slane %v1187_v21, %v1202_v22 }
  0x38   : > { %1148 = vmatprep.subr.bf16.mxu0 %v4191_v2 }
  0x3b   : > { %1149 = vmatpush1.bf16.msra.mxu0 %v4046_v5 }
  0x3c   : > { %1150 = vmatprep.subr.bf16.mxu0 %v4191_v2 }
  0x3f   : > { %1151 = vmatpush1.bf16.msra.mxu0 %v4047_v7 }
  0x40   : > { %1152 = vmatprep.subr.bf16.mxu0 %v4191_v2 }
  0x43   : > { %1153 = vmatpush1.bf16.msra.mxu0 %v4048_v8 }
  0x44   : > { %1154 = vmatprep.subr.bf16.mxu0 %v4191_v2 }
  0x47   : > { %1155 = vmatpush1.bf16.msra.mxu0 %v4049_v9 }
  0x48   : > { %1156 = vmatprep.subr.bf16.mxu0 %v4191_v2 }
  0x4b   : > { %1157 = vmatpush1.bf16.msra.mxu0 %v4050_v10 }
  0x4c   : > { %1166 = vmatprep.subr.bf16.mxu0 %v4191_v2 }
  0x4f   : > { %1167 = vmatpush2.bf16.msra.mxu0 %v4051_v11 }
  0x50   : > { %1168 = vmatprep.subr.bf16.mxu0 %v4191_v2 }
  0x53   : > { %1169 = vmatpush2.bf16.msra.mxu0 %v4052_v12 }
  0x54   : > { %1170 = vmatprep.subr.bf16.mxu0 %v4191_v2 }
  0x57   : > { %1171 = vmatpush2.bf16.msra.mxu0 %v4053_v13 }
  0x58   : > { %1172 = vmatprep.subr.bf16.mxu0 %v4191_v2 }
  0x5b   : > { %1173 = vmatpush2.bf16.msra.mxu0 %v4054_v14 }
  0x5e   : > { %1175 = vmatmul.mubr.bf16.vlgmr.msra.gmra.mxu0 %v4055_v15 }
 0x11e   : > { %v1176_v23 = vpop.f32.mrf.mxu0 }
 0x11f   : > { %v1177_v25 = vadd.f32 %v3687_v20, %v1176_v23 }
 0x120   : > { %v1178_v27 = vpop.f32.mrf.mxu0 }
 0x121   : > { %v1191_v28 = vadd.f32 %v1190_v24, %v1177_v25 }
 0x122   : > { %v1179_v29 = vpop.f32.mrf.mxu0 }
 0x123   : > { %v1195_v30 = vsel %vm1189_vm1, %v1191_v28, 0.0  ;;  %v1180_v31 = vadd.f32 %v3687_v20, %v1179_v29 }
 0x124   : > { %v1205_v32 = vsel %vm1188_vm2, %v1203_v26, %v1195_v30  ;;  %v1181_v33 = vpop.f32.mrf.mxu0 }
 0x125   : > { %1208 = vst.msk [vmem:[#allocation2] sm:$0xff] %vm1207_vm3, %v1205_v32  ;;  %v1192_v34 = vadd.f32 %v1190_v24, %v1180_v31 }
 0x127   : > { %v1196_v35 = vsel %vm1189_vm1, %v1192_v34, 0.0 }
 0x128   : > { %v1206_v36 = vsel %vm1188_vm2, %v1203_v26, %v1196_v35 }
 0x129   : > { %1209 = vst.msk [vmem:[#allocation2 + $0x8] sm:$0xff] %vm1207_vm3, %v1206_v36 }
 0x12a PF: > { %vm1214_vm4 = vcmask 261120   ;;  %v4058_v51 = vld [vmem:[%s4379_s26 + $0x8] sm:$0xff]   ;;  %v4192_v52 = vmov 0.0   ;;  %vm4193_vm5 = vmmov 0   ;;  %v4059_v53 = vld [vmem:[%s4379_s26] sm:$0xff]   ;;  %s4906_s3 = sld [smem:[#allocation17_spill]]  ;;  %v1330_v16 = vlaneseq }
 0x12b   : > { %3842 = vmatprep.subr.bf16.mxu0 %v4192_v52  ;;  %3846 = vmatprep.mubr.msk.bf16.mxu0 %vm4193_vm5, %v4192_v52  ;;  %s4908_s28 = sld [smem:[#allocation18_spill]]  ;;  %s4194_s6 = smov 96   ;;  %vm1337_vm6 = vcmask 64512   ;;  %v4195_v19 = vmov -1e+30   ;;  %vm2006_vm8 = vcmask 1043456  }
 0x12c   : > { %v4491_v37 = vld [vmem:[#allocation2] sm:$0xff]  ;;  %3843 = vmatpush3.bf16.msra.mxu0 %v4058_v51  ;;  %3855 = vmatprep.subr.mxu1 %v4192_v52  ;;  %s4910_s21 = sld [smem:[#allocation20_spill]]  ;;  %v1331_v17 = vand.u32 127, %v1330_v16  ;;  %s4198_s27 = smov 120   ;;  %vm2963_vm9 = vcmask 130048  }
 0x12d   : > { %v1215_v39 = vsel %vm1214_vm4, %v4491_v37, 0.0  ;;  %3844 = vmatprep.subr.bf16.mxu0 %v4192_v52  ;;  %3857 = vmatprep.mubr.msk.f32.mxu1 %vm4193_vm5, %v4192_v52  ;;  %s4199_s10 = smov 56   ;;  %s4202_s25 = smov 72  }
 0x12e   : > { %1216 = vadd.xlane.f32.xlu0 %v1215_v39  ;;  %vm1332_vm7 = vcmp.lt.s32.totalorder %v1331_v17, 5  ;;  %s4203_s7 = smov 48  }
 0x12f   : > { %v4549_v20 = vsel %vm1332_vm7, 0.0, %v4195_v19 }
 0x130   : > { %v4493_v38 = vld [vmem:[#allocation2 + $0x8] sm:$0xff]  ;;  %3845 = vmatpush3.bf16.msra.mxu0 %v4059_v53  ;;  %s4907_s9 = scalar_lea.vmem %s4906_s3, %s4361_s24  ;;  %s4196_s3 = smov 64  }
 0x131   : > { %v1218_v40 = vsel %vm1214_vm4, %v4493_v38, 0.0  ;;  %3850 = vmatprep.subr.mxu0 %v4192_v52  ;;  %v3703_v62 = vld [vmem:[%s4907_s9] ss:$0 sm:$0xff]  ;;  %s4909_s2 = scalar_lea.vmem %s4908_s28, %s4361_s24  ;;  %s4197_s9 = smov 88  }
 0x132   : > { %1219 = vadd.xlane.f32.xlu0 %v1218_v40  ;;  %v3704_v2 = vld [vmem:[%s4909_s2] ss:$0 sm:$0xff]  ;;  %s4911_s26 = scalar_lea.vmem %s4910_s21, %s4361_s24  ;;  %s4200_s28 = smov 80  }
 0x133   : > { %v3705_v7 = vld [vmem:[%s4911_s26] ss:$0 sm:$0xff]  ;;  %s4201_s2 = smov 112   ;;  %s4204_s21 = smov 104  }
 0x134   : > { %s4205_s26 = smov 40  }
 0x1b7   : > { %v1217_v41 = vpop.xlane.xlu0 %1216 }
 0x1b8   : > { %v1222_v42 = vmul.f32 0.03125, %v1217_v41 }
 0x1ba   : > { %v1224_v43 = vsub.f32 %v4491_v37, %v1222_v42 }
 0x1bb   : > { %v1220_v44 = vpop.xlane.xlu0 %1219 }
 0x1bc   : > { %v1223_v45 = vmul.f32 0.03125, %v1220_v44  ;;  %v1226_v46 = vmul.f32 %v1224_v43, %v1224_v43 }
 0x1be   : > { %v1225_v47 = vsub.f32 %v4493_v38, %v1223_v45  ;;  %v1228_v48 = vsel %vm1214_vm4, %v1226_v46, 0.0 }
 0x1bf   : > { %1229 = vadd.xlane.f32.xlu1 %v1228_v48 }
 0x1c0   : > { %v1227_v49 = vmul.f32 %v1225_v47, %v1225_v47 }
 0x1c2   : > { %v1231_v50 = vsel %vm1214_vm4, %v1227_v49, 0.0 }
 0x1c3   : > { %1232 = vadd.xlane.f32.xlu1 %v1231_v50 }
 0x248   : > { %v1230_v54 = vpop.xlane.xlu1 %1229 }
 0x249   : > { %v1234_v55 = vmul.f32 0.03125, %v1230_v54 }
 0x24b   : > { %v1236_v56 = vadd.f32 1e-06, %v1234_v55 }
 0x24c   : > { %v1233_v57 = vpop.xlane.xlu1 %1232 }
 0x24d   : > { %4073 = vrsqrt.f32 %v1236_v56  ;;  %v1235_v58 = vmul.f32 0.03125, %v1233_v57 }
 0x24f   : > { %v1237_v59 = vadd.f32 1e-06, %v1235_v58 }
 0x251   : > { %4075 = vrsqrt.f32 %v1237_v59 }
 0x25a   : > { %v4074_v60 = vpop.eup %4073 }
 0x25b   : > { %v1240_v61 = vmul.f32 %v4074_v60, %v1224_v43 }
 0x25d   : > { %v1248_v1 = vmul.f32 %v3703_v62, %v1240_v61 }
 0x25e   : > { %v4076_v63 = vpop.eup %4075 }
 0x25f   : > { %v1241_v0 = vmul.f32 %v4076_v63, %v1225_v47  ;;  %v1256_v4 = vadd.f32 %v3704_v2, %v1248_v1 }
 0x261   : > { %v1249_v3 = vmul.f32 %v3703_v62, %v1241_v0 }
 0x263   : > { %v1257_v5 = vadd.f32 %v3704_v2, %v1249_v3 }
 0x265   : > { %v1258_v6 = vpack.c.bf16 %v1257_v5, %v1256_v4 }
 0x267   : > { %3847 = vmatmul.mubr.msk.bf16.vlgmr.msra.gmra.mxu0 %vm1214_vm4, %v1258_v6 }
 0x268   : > { %3852 = vmatprep.mubr.msk.f32.mxu0 %vm4193_vm5, %v4192_v52 }
 0x327   : > { %v1319_v8 = vpop.f32.mrf.mxu0 }
 0x328   : > { %v4531_v9 = vadd.f32 %v3705_v7, %v1319_v8 }
 0x329   : > { %v3848_v10 = vpop.f32.mrf.mxu0 }
 0x32a   : > { %1335 = vrot.lane.b32.xlu0 %v4531_v9, %s4194_s6 }
 0x32b   : > { %v1322_v11 = vpop.f32.mrf.mxu0 }
 0x32c   : > { %v4534_v12 = vadd.f32 %v3705_v7, %v1322_v11 }
 0x32d   : > { %v3849_v13 = vpop.f32.mrf.mxu0 }
 0x32e   : > { %1413 = vrot.lane.b32.xlu1 %v4534_v12, %s4194_s6 }
 0x39c   : > { %v1336_v14 = vpop.permute.xlu0 %1335 }
 0x39d   : > { %3851 = vmatpush3.xpose.msk.msra.mxu0 %vm1337_vm6, %v1336_v14 }
 0x39e   : > { %3865 = vmatprep.subr.mxu0 %v4192_v52 }
 0x3a0   : > { %3853 = vmatmul.mubr.msk.f32.vlgmr.msra.gmra.mxu0 %vm1337_vm6, %v4531_v9  ;;  %v1414_v15 = vpop.permute.xlu1 %1413 }
 0x3a1   : > { %3856 = vmatpush3.xpose.msk.msra.mxu1 %vm1337_vm6, %v1414_v15  ;;  %3867 = vmatprep.mubr.msk.f32.mxu0 %vm4193_vm5, %v4192_v52 }
 0x3a2   : > { %3860 = vmatprep.subr.mxu1 %v4192_v52 }
 0x3a4   : > { %3858 = vmatmul.mubr.msk.f32.vlgmr.msra.gmra.mxu1 %vm1337_vm6, %v4534_v12 }
 0x3a5   : > { %3862 = vmatprep.mubr.msk.f32.mxu1 %vm4193_vm5, %v4192_v52 }
 0x460   : > { %v1408_v18 = vpop.f32.mrf.mxu0 }
 0x461   : > { %v1489_v21 = vmul.f32 0.35355338, %v1408_v18 }
 0x462   : > { %v3854_v22 = vpop.f32.mrf.mxu0 }
 0x463   : > { %v1491_v23 = vadd.f32 %v1489_v21, %v4549_v20 }
 0x464   : > { %v1485_v24 = vpop.f32.mrf.mxu1 }
 0x465   : > { %v1490_v25 = vmul.f32 0.35355338, %v1485_v24  ;;  %v1493_v26 = vsel %vm1337_vm6, %v1491_v23, -inf }
 0x466   : > { %v3859_v27 = vpop.f32.mrf.mxu1  ;;  %1494 = vmax.xlane.f32.xlu1 %v1493_v26 }
 0x467   : > { %v1492_v28 = vadd.f32 %v1490_v25, %v4549_v20 }
 0x469   : > { %v1496_v29 = vsel %vm1337_vm6, %v1492_v28, -inf }
 0x46a   : > { %1497 = vmax.xlane.f32.xlu0 %v1496_v29 }
 0x477   : > { %1591 = vrot.lane.b32.xlu1 %v4534_v12, %s4196_s3 }
 0x47b   : > { %1670 = vrot.lane.b32.xlu1 %v4531_v9, %s4197_s9 }
 0x47f   : > { %1748 = vrot.lane.b32.xlu1 %v4534_v12, %s4197_s9 }
 0x4ef   : > { %v1495_v30 = vpop.xlane.xlu1 %1494 }
 0x4f0   : > { %v1499_v31 = vsub.f32 %v1491_v23, %v1495_v30 }
 0x4f2   : > { %v1501_v32 = vmul.f32 1.442695, %v1499_v31  ;;  %v1327_v31 = vld [vmem:[%s4384_s29 + $0x4] sm:$0xf] }
 0x4f3   : > { %v1498_v33 = vpop.xlane.xlu0 %1497  ;;  %v1592_v34 = vpop.permute.xlu1 %1591 }
 0x4f4   : > { %4077 = vpow2.f32 %v1501_v32  ;;  %v1500_v35 = vsub.f32 %v1492_v28, %v1498_v33  ;;  %3866 = vmatpush3.msra.mxu0 %v1592_v34  ;;  %v2008_v32 = vsel %vm2006_vm8, %v1327_v31, 0 }
 0x4f5   : > { %3875 = vmatprep.subr.mxu0 %v4192_v52 }
 0x4f6   : > { %v1503_v36 = vmul.f32 1.442695, %v1500_v35  ;;  %v1326_v35 = vld [vmem:[%s4384_s29] sm:$0xf] }
 0x4f7   : > { %v1671_v43 = vpop.permute.xlu1 %1670 }
 0x4f8   : > { %4079 = vpow2.f32 %v1503_v36 }
 0x4fb   : > { %v1749_v44 = vpop.permute.xlu1 %1748 }
 0x501   : > { %v4078_v39 = vpop.eup %4077 }
 0x502   : > { %v1505_v40 = vsel %vm1337_vm6, %v4078_v39, 0.0 }
 0x503   : > { %1506 = vadd.xlane.f32.xlu0 %v1505_v40 }
 0x505   : > { %v4080_v41 = vpop.eup %4079 }
 0x506   : > { %v1508_v42 = vsel %vm1337_vm6, %v4080_v41, 0.0 }
 0x507   : > { %1509 = vadd.xlane.f32.xlu1 %v1508_v42 }
 0x518   : > { %1746 = vrot.lane.b32.xlu1 %v4534_v12, %s4198_s27 }
 0x519   : > { %1515 = vrot.lane.b32.xlu0 %v4531_v9, %s4196_s3  ;;  %s4912_s3 = sld [smem:[#allocation22_spill]] }
 0x51d   : > { %1668 = vrot.lane.b32.xlu0 %v4531_v9, %s4198_s27  ;;  %s4914_s27 = scalar_lea.vmem %s4851_s11, %s4361_s24 }
 0x51f   : > { %s4913_s9 = scalar_lea.vmem %s4912_s3, %s4361_s24  ;;  %s4917_s3 = scalar_lea.vmem %s4856_s16, %s4361_s24 }
 0x58c   : > { %v1507_v45 = vpop.xlane.xlu0 %1506 }
 0x58d   : > { %4081 = vrcp.f32 %v1507_v45 }
 0x590   : > { %v1516_v46 = vpop.permute.xlu0 %1515  ;;  %v1510_v47 = vpop.xlane.xlu1 %1509 }
 0x591   : > { %4083 = vrcp.f32 %v1510_v47  ;;  %3861 = vmatpush3.msra.mxu1 %v1516_v46 }
 0x592   : > { %3870 = vmatprep.subr.mxu1 %v4192_v52 }
 0x594   : > { %v1669_v53 = vpop.permute.xlu0 %1668  ;;  %v1747_v54 = vpop.permute.xlu1 %1746 }
 0x59a   : > { %v4082_v48 = vpop.eup %4081 }
 0x59b   : > { %v1513_v49 = vmul.f32 %v4082_v48, %v4078_v39 }
 0x59d   : > { %3863 = vmatmul.mubr.msk.f32.vlgmr.msra.gmra.mxu1 %vm1337_vm6, %v1513_v49 }
 0x59e   : > { %v4084_v50 = vpop.eup %4083  ;;  %3871 = vmatpush3.xpose.msk.msra.mxu1 %vm1337_vm6, %v1671_v43  ;;  %3872 = vmatprep.mubr.msk.f32.mxu1 %vm4193_vm5, %v4192_v52 }
 0x59f   : > { %v1514_v51 = vmul.f32 %v4084_v50, %v4080_v41  ;;  %3880 = vmatprep.subr.mxu1 %v4192_v52  ;;  %v2055_v41 = vsel %vm2006_vm8, %v1326_v35, 0 }
 0x5a1   : > { %3868 = vmatmul.mubr.msk.f32.vlgmr.msra.gmra.mxu0 %vm1337_vm6, %v1514_v51  ;;  %3873 = vmatmul.mubr.msk.f32.vlgmr.msra.gmra.mxu1 %vm1337_vm6, %v1669_v53 }
 0x5a2   : > { %3876 = vmatpush3.xpose.msk.msra.mxu0 %vm1337_vm6, %v1749_v44  ;;  %3877 = vmatprep.mubr.msk.f32.mxu0 %vm4193_vm5, %v4192_v52 }
 0x5a3   : > { %3885 = vmatprep.subr.mxu0 %v4192_v52  ;;  %3882 = vmatprep.mubr.msk.f32.mxu1 %vm4193_vm5, %v4192_v52 }
 0x5a5   : > { %3878 = vmatmul.mubr.msk.f32.vlgmr.msra.gmra.mxu0 %vm1337_vm6, %v1747_v54 }
 0x5a6   : > { %3887 = vmatprep.mubr.msk.f32.mxu0 %vm4193_vm5, %v4192_v52 }
 0x65d   : > { %v4581_v55 = vpop.f32.mrf.mxu1 }
 0x65f   : > { %v3864_v56 = vpop.f32.mrf.mxu1 }
 0x661   : > { %v4583_v57 = vpop.f32.mrf.mxu0  ;;  %v1742_v58 = vpop.f32.mrf.mxu1 }
 0x662   : > { %v1667_v59 = vpack.c.bf16 %v4583_v57, %v4581_v55  ;;  %v1824_v60 = vmul.f32 0.35355338, %v1742_v58 }
 0x663   : > { %v3869_v61 = vpop.f32.mrf.mxu0  ;;  %v3874_v62 = vpop.f32.mrf.mxu1 }
 0x664   : > { %v1826_v63 = vadd.f32 %v1824_v60, %v4549_v20 }
 0x665   : > { %v1820_v0 = vpop.f32.mrf.mxu0 }
 0x666   : > { %v1825_v1 = vmul.f32 0.35355338, %v1820_v0  ;;  %v1828_v2 = vsel %vm1337_vm6, %v1826_v63, -inf }
 0x667   : > { %1829 = vmax.xlane.f32.xlu0 %v1828_v2  ;;  %v3879_v3 = vpop.f32.mrf.mxu0 }
 0x668   : > { %v1827_v4 = vadd.f32 %v1825_v1, %v4549_v20 }
 0x66a   : > { %v1831_v5 = vsel %vm1337_vm6, %v1827_v4, -inf }
 0x66b   : > { %1832 = vmax.xlane.f32.xlu1 %v1831_v5 }
 0x67c   : > { %1926 = vrot.lane.b32.xlu1 %v4534_v12, %s4199_s10 }
 0x680   : > { %2178 = vrot.lane.b32.xlu1 %v4534_v12, %s4200_s28 }
 0x684   : > { %2176 = vrot.lane.b32.xlu1 %v4534_v12, %s4201_s2 }
 0x688   : > { %2098 = vrot.lane.b32.xlu1 %v4531_v9, %s4201_s2  ;;  %s4915_s2 = scalar_lea.vmem %s4852_s12, %s4361_s24 }
 0x68c   : > { %2484 = vrot.lane.b32.xlu1 %v4531_v9, %s4202_s25 }
 0x6f0   : > { %v1830_v6 = vpop.xlane.xlu0 %1829 }
 0x6f1   : > { %v1834_v7 = vsub.f32 %v1826_v63, %v1830_v6 }
 0x6f3   : > { %v1836_v8 = vmul.f32 1.442695, %v1834_v7 }
 0x6f4   : > { %v1833_v10 = vpop.xlane.xlu1 %1832 }
 0x6f5   : > { %4085 = vpow2.f32 %v1836_v8  ;;  %v1835_v11 = vsub.f32 %v1827_v4, %v1833_v10 }
 0x6f7   : > { %v1838_v13 = vmul.f32 1.442695, %v1835_v11 }
 0x6f8   : > { %v1927_v14 = vpop.permute.xlu1 %1926 }
 0x6f9   : > { %4087 = vpow2.f32 %v1838_v13  ;;  %3886 = vmatpush3.msra.mxu0 %v1927_v14 }
 0x6fa   : > { %3890 = vmatprep.subr.bf16.mxu0 %v4192_v52 }
 0x6fc   : > { %v2179_v22 = vpop.permute.xlu1 %2178 }
 0x700   : > { %v2177_v25 = vpop.permute.xlu1 %2176 }
 0x702   : > { %v4086_v15 = vpop.eup %4085 }
 0x703   : > { %v1840_v16 = vsel %vm1337_vm6, %v4086_v15, 0.0 }
 0x704   : > { %1841 = vadd.xlane.f32.xlu0 %v1840_v16  ;;  %v2099_v30 = vpop.permute.xlu1 %2098 }
 0x706   : > { %v4088_v17 = vpop.eup %4087 }
 0x707   : > { %v1843_v18 = vsel %vm1337_vm6, %v4088_v17, 0.0 }
 0x708   : > { %1844 = vadd.xlane.f32.xlu0 %v1843_v18  ;;  %v2485_v5 = vpop.permute.xlu1 %2484 }
 0x71e   : > { %1850 = vrot.lane.b32.xlu0 %v4531_v9, %s4199_s10 }
 0x722   : > { %2100 = vrot.lane.b32.xlu0 %v4531_v9, %s4200_s28 }
 0x78d   : > { %v1842_v19 = vpop.xlane.xlu0 %1841 }
 0x78e   : > { %4089 = vrcp.f32 %v1842_v19 }
 0x791   : > { %v1845_v21 = vpop.xlane.xlu0 %1844 }
 0x792   : > { %4091 = vrcp.f32 %v1845_v21 }
 0x795   : > { %v1851_v23 = vpop.permute.xlu0 %1850 }
 0x796   : > { %3881 = vmatpush3.msra.mxu1 %v1851_v23 }
 0x797   : > { %3902 = vmatprep.subr.mxu1 %v4192_v52 }
 0x799   : > { %v2101_v27 = vpop.permute.xlu0 %2100 }
 0x79b   : > { %v4090_v24 = vpop.eup %4089 }
 0x79c   : > { %v1848_v26 = vmul.f32 %v4090_v24, %v4086_v15 }
 0x79e   : > { %3883 = vmatmul.mubr.msk.f32.vlgmr.msra.gmra.mxu1 %vm1337_vm6, %v1848_v26 }
 0x79f   : > { %v4092_v28 = vpop.eup %4091  ;;  %3903 = vmatpush3.xpose.msk.msra.mxu1 %vm1337_vm6, %v2101_v27  ;;  %3904 = vmatprep.mubr.msk.f32.mxu1 %vm4193_vm5, %v4192_v52 }
 0x7a0   : > { %v1849_v29 = vmul.f32 %v4092_v28, %v4088_v17  ;;  %3912 = vmatprep.subr.mxu1 %v4192_v52 }
 0x7a2   : > { %3888 = vmatmul.mubr.msk.f32.vlgmr.msra.gmra.mxu0 %vm1337_vm6, %v1849_v29  ;;  %3905 = vmatmul.mubr.msk.f32.vlgmr.msra.gmra.mxu1 %vm1337_vm6, %v2099_v30 }
 0x7a3   : > { %3892 = vmatprep.mubr.msk.bf16.mxu0 %vm4193_vm5, %v4192_v52  ;;  %3914 = vmatprep.mubr.msk.f32.mxu1 %vm4193_vm5, %v4192_v52 }
 0x7a4   : > { %3891 = vmatpush3.bf16.msra.mxu0 %v2008_v32 }
 0x7a5   : > { %3896 = vmatprep.subr.bf16.mxu0 %v4192_v52 }
 0x85e   : > { %v1922_v33 = vpop.f32.mrf.mxu1 }
 0x860   : > { %v3884_v34 = vpop.f32.mrf.mxu1 }
 0x862   : > { %v1998_v36 = vpop.f32.mrf.mxu0  ;;  %v2172_v39 = vpop.f32.mrf.mxu1 }
 0x863   : > { %v2002_v40 = vpack.c.bf16 %v1998_v36, %v1922_v33  ;;  %v2254_v2 = vmul.f32 0.35355338, %v2172_v39  ;;  %v1328_v36 = vld [vmem:[%s4384_s29 + $0x8] sm:$0xf] }
 0x864   : > { %v3889_v42 = vpop.f32.mrf.mxu0  ;;  %v3906_v43 = vpop.f32.mrf.mxu1  ;;  %v2437_v39 = vsel %vm2006_vm8, %v1328_v36, 0  ;;  %v4064_v36 = vld [vmem:[%s4401_s4] sm:$0xff]  }
 0x865   : > { %3893 = vmatmul.mubr.msk.bf16.vlgmr.msra.gmra.mxu0 %vm1337_vm6, %v2002_v40  ;;  %v2256_v3 = vadd.f32 %v2254_v2, %v4549_v20 }
 0x866   : > { %3897 = vmatpush3.bf16.msra.mxu0 %v2055_v41  ;;  %3898 = vmatprep.mubr.msk.bf16.mxu0 %vm4193_vm5, %v4192_v52 }
 0x867   : > { %3907 = vmatprep.subr.mxu0 %v4192_v52  ;;  %v2258_v4 = vsel %vm1337_vm6, %v2256_v3, -inf }
 0x86d   : > { %3899 = vmatmul.mubr.msk.bf16.vlgmr.msra.gmra.mxu0 %vm1337_vm6, %v1667_v59 }
 0x86e   : > { %3908 = vmatpush3.xpose.msk.msra.mxu0 %vm1337_vm6, %v2179_v22  ;;  %3909 = vmatprep.mubr.msk.f32.mxu0 %vm4193_vm5, %v4192_v52 }
 0x86f   : > { %3917 = vmatprep.subr.mxu0 %v4192_v52 }
 0x875   : > { %3910 = vmatmul.mubr.msk.f32.vlgmr.msra.gmra.mxu0 %vm1337_vm6, %v2177_v25 }
 0x876   : > { %3919 = vmatprep.mubr.msk.f32.mxu0 %vm4193_vm5, %v4192_v52 }
 0x925   : > { %v2044_v44 = vpop.f32.mrf.mxu0 }
 0x927   : > { %v3894_v45 = vpop.f32.mrf.mxu0 }
 0x929   : > { %v2047_v46 = vpop.f32.mrf.mxu0 }
 0x92b   : > { %v3895_v47 = vpop.f32.mrf.mxu0 }
 0x92d   : > { %v2091_v48 = vpop.f32.mrf.mxu0 }
 0x92e   : > { %v4634_v49 = vadd.f32 %v2091_v48, %v2044_v44 }
 0x92f   : > { %v3900_v50 = vpop.f32.mrf.mxu0 }
 0x931   : > { %v2094_v51 = vpop.f32.mrf.mxu0 }
 0x932   : > { %v4636_v53 = vadd.f32 %v2094_v51, %v2047_v46 }
 0x933   : > { %v3901_v54 = vpop.f32.mrf.mxu0 }
 0x935   : > { %v2250_v55 = vpop.f32.mrf.mxu0 }
 0x936   : > { %v2255_v56 = vmul.f32 0.35355338, %v2250_v55 }
 0x937   : > { %v3911_v57 = vpop.f32.mrf.mxu0 }
 0x938   : > { %v2257_v58 = vadd.f32 %v2255_v56, %v4549_v20 }
 0x93a   : > { %v2261_v59 = vsel %vm1337_vm6, %v2257_v58, -inf }
 0x93b   : > { %2262 = vmax.xlane.f32.xlu0 %v2261_v59 }
 0x951   : > { %2356 = vrot.lane.b32.xlu0 %v4534_v12, %s4203_s7 }
 0x955   : > { %2482 = vrot.lane.b32.xlu0 %v4531_v9, %s4204_s21 }
 0x959   : > { %2560 = vrot.lane.b32.xlu0 %v4534_v12, %s4204_s21  ;;  %s4916_s21 = scalar_lea.vmem %s4854_s14, %s4361_s24  ;;  %s4918_s24 = sld [smem:[#allocation11_spill]] }
 0x95f   : > { %p3760_p5 = scmp.ne.s32.totalorder %s4918_s24, 1 }
 0x960   : > { %s4920_s10 = sld [smem:[#allocation24_spill]] (!%p3760_p5) }
 0x9c4   : > { %v2263_v60 = vpop.xlane.xlu0 %2262 }
 0x9c5   : > { %v2265_v61 = vsub.f32 %v2257_v58, %v2263_v60 }
 0x9c7   : > { %v2268_v62 = vmul.f32 1.442695, %v2265_v61  ;;  %v1329_v61 = vld [vmem:[%s4384_s29 + $0xc] sm:$0xf] }
 0x9c8   : > { %v2357_v63 = vpop.permute.xlu0 %2356 }
 0x9c9   : > { %4093 = vpow2.f32 %v2268_v62  ;;  %3918 = vmatpush3.msra.mxu0 %v2357_v63  ;;  %v2821_v62 = vsel %vm2006_vm8, %v1329_v61, 0 }
 0x9ca   : > { %3928 = vmatprep.subr.mxu0 %v4192_v52 }
 0x9cc   : > { %v2483_v10 = vpop.permute.xlu0 %2482 }
 0x9d0   : > { %v2561_v13 = vpop.permute.xlu0 %2560 }
 0x9d6   : > { %v4094_v0 = vpop.eup %4093 }
 0x9d7   : > { %v2273_v1 = vsel %vm1337_vm6, %v4094_v0, 0.0 }
 0x9d8   : > { %2274 = vadd.xlane.f32.xlu1 %v2273_v1 }
 0x9e9   : > { %2562 = vrot.lane.b32.xlu1 %v4534_v12, %s4202_s25  ;;  %s4921_s25 = sld [smem:[#allocation25_spill]] (!%p3760_p5) }
 0xa0d   : > { %2259 = vmax.xlane.f32.xlu1 %v2258_v4 }
 0xa61   : > { %v2275_v6 = vpop.xlane.xlu1 %2274 }
 0xa62   : > { %4095 = vrcp.f32 %v2275_v6 }
 0xa65   : > { %v2563_v11 = vpop.permute.xlu1 %2562 }
 0xa6f   : > { %v4096_v7 = vpop.eup %4095 }
 0xa70   : > { %v2279_v8 = vmul.f32 %v4096_v7, %v4094_v0 }
 0xa72   : > { %3920 = vmatmul.mubr.msk.f32.vlgmr.msra.gmra.mxu0 %vm1337_vm6, %v2279_v8 }
 0xa73   : > { %3929 = vmatpush3.xpose.msk.msra.mxu0 %vm1337_vm6, %v2485_v5  ;;  %3930 = vmatprep.mubr.msk.f32.mxu0 %vm4193_vm5, %v4192_v52 }
 0xa74   : > { %3933 = vmatprep.subr.mxu0 %v4192_v52 }
 0xa76   : > { %3931 = vmatmul.mubr.msk.f32.vlgmr.msra.gmra.mxu0 %vm1337_vm6, %v2483_v10 }
 0xa77   : > { %3934 = vmatpush3.xpose.msk.msra.mxu0 %vm1337_vm6, %v2563_v11  ;;  %3935 = vmatprep.mubr.msk.f32.mxu0 %vm4193_vm5, %v4192_v52  ;;  %v4060_v11 = vld [vmem:[%s4420_s8 + $0x8] sm:$0xff]  }
 0xa78   : > { %3943 = vmatprep.subr.mxu0 %v4192_v52 }
 0xa7a   : > { %3936 = vmatmul.mubr.msk.f32.vlgmr.msra.gmra.mxu0 %vm1337_vm6, %v2561_v13 }
 0xa7b   : > { %3945 = vmatprep.mubr.msk.f32.mxu0 %vm4193_vm5, %v4192_v52 }
 0xa96   : > { %v2260_v14 = vpop.xlane.xlu1 %2259 }
 0xa97   : > { %v2264_v15 = vsub.f32 %v2256_v3, %v2260_v14  ;;  %v3737_v14 = vld [vmem:[%s4913_s9] ss:$0 sm:$0xff] }
 0xa99   : > { %v2266_v16 = vmul.f32 1.442695, %v2264_v15 }
 0xa9b   : > { %4097 = vpow2.f32 %v2266_v16 }
 0xaa8   : > { %v4098_v17 = vpop.eup %4097 }
 0xaa9   : > { %v2270_v18 = vsel %vm1337_vm6, %v4098_v17, 0.0 }
 0xaaa   : > { %2271 = vadd.xlane.f32.xlu0 %v2270_v18 }
 0xac0   : > { %2280 = vrot.lane.b32.xlu0 %v4531_v9, %s4203_s7 }
 0xac4   : > { %2740 = vrot.lane.b32.xlu0 %v4534_v12, %s4205_s26 }
 0xb32   : > { %v2428_v19 = vpop.f32.mrf.mxu0 }
 0xb33   : > { %v2272_v21 = vpop.xlane.xlu0 %2271 }
 0xb34   : > { %4099 = vrcp.f32 %v2272_v21  ;;  %v3921_v22 = vpop.f32.mrf.mxu0 }
 0xb36   : > { %v2556_v23 = vpop.f32.mrf.mxu0 }
 0xb37   : > { %v2638_v24 = vmul.f32 0.35355338, %v2556_v23  ;;  %v2281_v25 = vpop.permute.xlu0 %2280 }
 0xb38   : > { %3913 = vmatpush3.msra.mxu1 %v2281_v25  ;;  %v3932_v26 = vpop.f32.mrf.mxu0 }
 0xb39   : > { %v2640_v27 = vadd.f32 %v2638_v24, %v4549_v20  ;;  %3922 = vmatprep.subr.bf16.mxu1 %v4192_v52 }
 0xb3a   : > { %v2634_v28 = vpop.f32.mrf.mxu0 }
 0xb3b   : > { %v2639_v29 = vmul.f32 0.35355338, %v2634_v28  ;;  %v2741_v30 = vpop.permute.xlu0 %2740  ;;  %v2642_v31 = vsel %vm1337_vm6, %v2640_v27, -inf }
 0xb3c   : > { %3944 = vmatpush3.msra.mxu0 %v2741_v30  ;;  %2643 = vmax.xlane.f32.xlu1 %v2642_v31  ;;  %v3937_v12 = vpop.f32.mrf.mxu0 }
 0xb3d   : > { %v2641_v32 = vadd.f32 %v2639_v29, %v4549_v20  ;;  %3954 = vmatprep.subr.bf16.mxu0 %v4192_v52 }
 0xb3f   : > { %v2645_v33 = vsel %vm1337_vm6, %v2641_v32, -inf }
 0xb40   : > { %2646 = vmax.xlane.f32.xlu1 %v2645_v33 }
 0xb41   : > { %v4100_v34 = vpop.eup %4099 }
 0xb42   : > { %v2278_v35 = vmul.f32 %v4100_v34, %v4098_v17 }
 0xb44   : > { %3915 = vmatmul.mubr.msk.f32.vlgmr.msra.gmra.mxu1 %vm1337_vm6, %v2278_v35  ;;  %v4063_v35 = vld [vmem:[%s4401_s4 + $0x8] sm:$0xff]  }
 0xb45   : > { %3924 = vmatprep.mubr.msk.bf16.mxu1 %vm4193_vm5, %v4192_v52  ;;  %3923 = vmatpush3.bf16.msra.mxu1 %v2437_v39  ;;  %v3738_v39 = vld [vmem:[%s1010_s22] ss:$0 sm:$0xff] }
 0xb46   : > { %3938 = vmatprep.subr.mxu1 %v4192_v52 }
 0xbc5   : > { %v2644_v40 = vpop.xlane.xlu1 %2643 }
 0xbc6   : > { %v2648_v20 = vsub.f32 %v2640_v27, %v2644_v40 }
 0xbc8   : > { %v2650_v41 = vmul.f32 1.442695, %v2648_v20 }
 0xbc9   : > { %v2647_v42 = vpop.xlane.xlu1 %2646 }
 0xbca   : > { %4101 = vpow2.f32 %v2650_v41  ;;  %v2649_v43 = vsub.f32 %v2641_v32, %v2647_v42 }
 0xbcc   : > { %v2652_v44 = vmul.f32 1.442695, %v2649_v43 }
 0xbce   : > { %4103 = vpow2.f32 %v2652_v44 }
 0xbd7   : > { %v4102_v45 = vpop.eup %4101 }
 0xbd8   : > { %v2654_v46 = vsel %vm1337_vm6, %v4102_v45, 0.0 }
 0xbd9   : > { %2655 = vadd.xlane.f32.xlu1 %v2654_v46 }
 0xbdb   : > { %v4104_v47 = vpop.eup %4103 }
 0xbdc   : > { %v2657_v48 = vsel %vm1337_vm6, %v4104_v47, 0.0 }
 0xbdd   : > { %2658 = vadd.xlane.f32.xlu1 %v2657_v48 }
 0xbee   : > { %2664 = vrot.lane.b32.xlu1 %v4531_v9, %s4205_s26 }
 0xc04   : > { %v2352_v50 = vpop.f32.mrf.mxu1 }
 0xc05   : > { %v2432_v51 = vpack.c.bf16 %v2428_v19, %v2352_v50 }
 0xc06   : > { %v3916_v54 = vpop.f32.mrf.mxu1 }
 0xc07   : > { %3925 = vmatmul.mubr.msk.bf16.vlgmr.msra.gmra.mxu1 %vm1337_vm6, %v2432_v51 }
 0xc08   : > { %3940 = vmatprep.mubr.msk.f32.mxu1 %vm4193_vm5, %v4192_v52 }
 0xc62   : > { %v2656_v55 = vpop.xlane.xlu1 %2655 }
 0xc63   : > { %4105 = vrcp.f32 %v2656_v55 }
 0xc66   : > { %v2659_v56 = vpop.xlane.xlu1 %2658 }
 0xc67   : > { %4107 = vrcp.f32 %v2659_v56 }
 0xc6a   : > { %v2665_v57 = vpop.permute.xlu1 %2664 }
 0xc6b   : > { %3939 = vmatpush3.msra.mxu1 %v2665_v57 }
 0xc6c   : > { %3948 = vmatprep.subr.bf16.mxu1 %v4192_v52 }
 0xc70   : > { %v4106_v58 = vpop.eup %4105 }
 0xc71   : > { %v2662_v59 = vmul.f32 %v4106_v58, %v4102_v45 }
 0xc73   : > { %3941 = vmatmul.mubr.msk.f32.vlgmr.msra.gmra.mxu1 %vm1337_vm6, %v2662_v59  ;;  %v3745_v59 = vld [vmem:[%s4914_s27] ss:$0 sm:$0xff] }
 0xc74   : > { %v4108_v9 = vpop.eup %4107  ;;  %3950 = vmatprep.mubr.msk.bf16.mxu1 %vm4193_vm5, %v4192_v52  ;;  %3949 = vmatpush3.bf16.msra.mxu1 %v2821_v62  ;;  %v3746_v62 = vld [vmem:[%s4915_s2] ss:$0 sm:$0xff] }
 0xc75   : > { %v2663_v60 = vmul.f32 %v4108_v9, %v4104_v47  ;;  %3962 = vmatprep.subr.bf16.mxu1 %v4192_v52 }
 0xc77   : > { %3946 = vmatmul.mubr.msk.f32.vlgmr.msra.gmra.mxu0 %vm1337_vm6, %v2663_v60 }
 0xc78   : > { %3958 = vmatprep.mubr.msk.bf16.mxu0 %vm4193_vm5, %v4192_v52  ;;  %3955 = vmatpush3.bf16.msra.mxu0 %v4060_v11 }
 0xc79   : > { %3956 = vmatprep.subr.bf16.mxu0 %v4192_v52 }
 0xcc7   : > { %v2473_v63 = vpop.f32.mrf.mxu1 }
 0xcc8   : > { %v2480_v0 = vadd.f32 %v2473_v63, %v4634_v49  ;;  %v4061_v49 = vld [vmem:[%s4420_s8] sm:$0xff]  }
 0xcc9   : > { %v3926_v1 = vpop.f32.mrf.mxu1  ;;  %3957 = vmatpush3.bf16.msra.mxu0 %v4061_v49  ;;  %v4070_v49 = vld [vmem:[%s4411_s30 + $0x10] sm:$0xff]  }
 0xcca   : > { %3968 = vmatprep.subr.bf16.mxu0 %v4192_v52 }
 0xccb   : > { %v2476_v2 = vpop.f32.mrf.mxu1 }
 0xccc   : > { %v2481_v3 = vadd.f32 %v2476_v2, %v4636_v53 }
 0xccd   : > { %v3927_v4 = vpop.f32.mrf.mxu1 }
 0xcce   : > { %v4066_v4 = vld [vmem:[%s4411_s30 + $0x30] sm:$0xff]  }
 0xd33   : > { %v2736_v5 = vpop.f32.mrf.mxu1 }
 0xd35   : > { %v3942_v6 = vpop.f32.mrf.mxu1 }
 0xd36   : > { %v4068_v6 = vld [vmem:[%s4411_s30 + $0x20] sm:$0xff]  }
 0xd37   : > { %v2812_v7 = vpop.f32.mrf.mxu0 }
 0xd38   : > { %v2816_v8 = vpack.c.bf16 %v2812_v7, %v2736_v5  ;;  %v4067_v5 = vld [vmem:[%s4411_s30 + $0x28] sm:$0xff]  }
 0xd39   : > { %v3947_v10 = vpop.f32.mrf.mxu0 }
 0xd3a   : > { %3951 = vmatmul.mubr.msk.bf16.vlgmr.msra.gmra.mxu1 %vm1337_vm6, %v2816_v8  ;;  %v4069_v8 = vld [vmem:[%s4411_s30 + $0x18] sm:$0xff]  }
 0xd3b   : > { %3964 = vmatprep.mubr.msk.bf16.mxu1 %vm4193_vm5, %v4192_v52 }
 0xdfa   : > { %v2857_v53 = vpop.f32.mrf.mxu1 }
 0xdfb   : > { %v2864_v13 = vadd.f32 %v2857_v53, %v2480_v0 }
 0xdfc   : > { %v3952_v15 = vpop.f32.mrf.mxu1 }
 0xdfd   : > { %v2866_v16 = vadd.f32 %v2864_v13, %v4491_v37  ;;  %v4062_v37 = vld [vmem:[%s4434_s13] sm:$0xff]   ;;  %v4071_v13 = vld [vmem:[%s4411_s30 + $0x8] sm:$0xff]   ;;  %s4919_s13 = sld [smem:[#allocation26_spill]] (!%p3760_p5) }
 0xdfe   : > { %v2860_v17 = vpop.f32.mrf.mxu1  ;;  %3963 = vmatpush3.bf16.msra.mxu1 %v4062_v37  ;;  %v3747_v15 = vld [vmem:[%s4916_s21] ss:$0 sm:$0xff] }
 0xdff   : > { %v4712_v18 = vadd.f32 %v3737_v14, %v2866_v16  ;;  %v2865_v19 = vadd.f32 %v2860_v17, %v2481_v3  ;;  %3976 = vmatprep.subr.bf16.mxu1 %v4192_v52  ;;  %v4065_v3 = vld [vmem:[%s4411_s30 + $0x38] sm:$0xff]  }
 0xe00   : > { %v3953_v21 = vpop.f32.mrf.mxu1 }
 0xe01   : > { %v2867_v22 = vadd.f32 %v2865_v19, %v4493_v38  ;;  %v3012_v23 = vsel %vm1214_vm4, %v4712_v18, 0.0 }
 0xe02   : > { %3013 = vadd.xlane.f32.xlu0 %v3012_v23 }
 0xe03   : > { %v4717_v24 = vadd.f32 %v3737_v14, %v2867_v22  ;;  %v4072_v14 = vld [vmem:[%s4411_s30] sm:$0xff]  }
 0xe05   : > { %v3015_v25 = vsel %vm1214_vm4, %v4717_v24, 0.0  ;;  %v2877_v26 = vpack.c.bf16 %v4717_v24, %v4712_v18 }
 0xe06   : > { %3016 = vadd.xlane.f32.xlu1 %v3015_v25 }
 0xe07   : > { %3959 = vmatmul.mubr.msk.bf16.vlgmr.msra.gmra.mxu0 %vm1214_vm4, %v2877_v26 }
 0xe08   : > { %3972 = vmatprep.mubr.msk.bf16.mxu0 %vm4193_vm5, %v4192_v52  ;;  %3969 = vmatpush3.bf16.msra.mxu0 %v4063_v35 }
 0xe09   : > { %3970 = vmatprep.subr.bf16.mxu0 %v4192_v52 }
 0xe0c   : > { %3971 = vmatpush3.bf16.msra.mxu0 %v4064_v36 }
 0xe8b   : > { %v3014_v38 = vpop.xlane.xlu0 %3013 }
 0xe8c   : > { %v3018_v27 = vmul.f32 0.03125, %v3014_v38 }
 0xe8e   : > { %v3020_v28 = vsub.f32 %v4712_v18, %v3018_v27 }
 0xe8f   : > { %v3017_v29 = vpop.xlane.xlu1 %3016 }
 0xe90   : > { %v3019_v30 = vmul.f32 0.03125, %v3017_v29  ;;  %v3022_v31 = vmul.f32 %v3020_v28, %v3020_v28 }
 0xe92   : > { %v3021_v12 = vsub.f32 %v4717_v24, %v3019_v30  ;;  %v3024_v32 = vsel %vm1214_vm4, %v3022_v31, 0.0 }
 0xe93   : > { %3025 = vadd.xlane.f32.xlu0 %v3024_v32 }
 0xe94   : > { %v3023_v33 = vmul.f32 %v3021_v12, %v3021_v12 }
 0xe96   : > { %v3027_v34 = vsel %vm1214_vm4, %v3023_v33, 0.0 }
 0xe97   : > { %3028 = vadd.xlane.f32.xlu0 %v3027_v34 }
 0xec7   : > { %v2938_v40 = vpop.f32.mrf.mxu0 }
 0xec8   : > { %v2939_v41 = vadd.f32 %v3738_v39, %v2938_v40 }
 0xec9   : > { %v3960_v20 = vpop.f32.mrf.mxu0 }
 0xeca   : > { %v2945_v45 = vmax.f32 %v2939_v41, 0.0  ;;  %v3742_v41 = vld [vmem:[%s1018_s0] ss:$0 sm:$0xff] }
 0xecb   : > { %v2941_v42 = vpop.f32.mrf.mxu0 }
 0xecc   : > { %v2942_v43 = vadd.f32 %v3738_v39, %v2941_v42  ;;  %v3751_v42 = vld [vmem:[%s4917_s3] ss:$0 sm:$0xff] }
 0xecd   : > { %v3961_v44 = vpop.f32.mrf.mxu0 }
 0xece   : > { %v2946_v46 = vmax.f32 %v2942_v43, 0.0 }
 0xed0   : > { %v2947_v47 = vpack.c.bf16 %v2946_v46, %v2945_v45 }
 0xed2   : > { %3965 = vmatmul.mubr.msk.bf16.vlgmr.msra.gmra.mxu1 %vm2963_vm9, %v2947_v47 }
 0xed3   : > { %3992 = vmatprep.mubr.msk.bf16.mxu1 %vm4193_vm5, %v4192_v52  ;;  %3977 = vmatpush3.bf16.msra.mxu1 %v4065_v3 }
 0xed4   : > { %3978 = vmatprep.subr.bf16.mxu1 %v4192_v52 }
 0xed7   : > { %3979 = vmatpush3.bf16.msra.mxu1 %v4066_v4 }
 0xed8   : > { %3980 = vmatprep.subr.bf16.mxu1 %v4192_v52 }
 0xedb   : > { %3981 = vmatpush3.bf16.msra.mxu1 %v4067_v5 }
 0xedc   : > { %3982 = vmatprep.subr.bf16.mxu1 %v4192_v52 }
 0xedf   : > { %3983 = vmatpush3.bf16.msra.mxu1 %v4068_v6 }
 0xee0   : > { %3984 = vmatprep.subr.bf16.mxu1 %v4192_v52 }
 0xee3   : > { %3985 = vmatpush3.bf16.msra.mxu1 %v4069_v8 }
 0xee4   : > { %3986 = vmatprep.subr.bf16.mxu1 %v4192_v52 }
 0xee7   : > { %3987 = vmatpush3.bf16.msra.mxu1 %v4070_v49 }
 0xee8   : > { %3988 = vmatprep.subr.bf16.mxu1 %v4192_v52 }
 0xeeb   : > { %3989 = vmatpush3.bf16.msra.mxu1 %v4071_v13 }
 0xeec   : > { %3990 = vmatprep.subr.bf16.mxu1 %v4192_v52 }
 0xeef   : > { %3991 = vmatpush3.bf16.msra.mxu1 %v4072_v14 }
 0xf1c   : > { %v3026_v48 = vpop.xlane.xlu0 %3025 }
 0xf1d   : > { %v3030_v50 = vmul.f32 0.03125, %v3026_v48 }
 0xf1f   : > { %v3032_v51 = vadd.f32 1e-06, %v3030_v50 }
 0xf20   : > { %v3029_v54 = vpop.xlane.xlu0 %3028 }
 0xf21   : > { %4109 = vrsqrt.f32 %v3032_v51  ;;  %v3031_v55 = vmul.f32 0.03125, %v3029_v54 }
 0xf23   : > { %v3033_v56 = vadd.f32 1e-06, %v3031_v55 }
 0xf25   : > { %4111 = vrsqrt.f32 %v3033_v56 }
 0xf2e   : > { %v4110_v57 = vpop.eup %4109 }
 0xf2f   : > { %v3036_v58 = vmul.f32 %v4110_v57, %v3020_v28 }
 0xf31   : > { %v3044_v61 = vmul.f32 %v3745_v59, %v3036_v58 }
 0xf32   : > { %v4112_v9 = vpop.eup %4111 }
 0xf33   : > { %v3037_v60 = vmul.f32 %v4112_v9, %v3021_v12  ;;  %v3052_v0 = vadd.f32 %v3746_v62, %v3044_v61 }
 0xf35   : > { %v3045_v63 = vmul.f32 %v3745_v59, %v3037_v60 }
 0xf37   : > { %v3053_v1 = vadd.f32 %v3746_v62, %v3045_v63 }
 0xf39   : > { %v3054_v2 = vpack.c.bf16 %v3053_v1, %v3052_v0 }
 0xf3b   : > { %3973 = vmatmul.mubr.msk.bf16.vlgmr.msra.gmra.mxu0 %vm1214_vm4, %v3054_v2 }
 0xf92   : > { %v3001_v7 = vpop.f32.mrf.mxu1 }
 0xf93   : > { %v3002_v43 = vadd.f32 %v3742_v41, %v3001_v7 }
 0xf94   : > { %v3966_v10 = vpop.f32.mrf.mxu1 }
 0xf95   : > { %v3008_v47 = vmul.f32 0.1, %v3002_v43 }
 0xf96   : > { %v3004_v11 = vpop.f32.mrf.mxu1 }
 0xf97   : > { %v3005_v48 = vadd.f32 %v3742_v41, %v3004_v11 }
 0xf98   : > { %v3967_v53 = vpop.f32.mrf.mxu1 }
 0xf99   : > { %v3009_v57 = vmul.f32 0.1, %v3005_v48 }
 0xffb   : > { %v3115_v16 = vpop.f32.mrf.mxu0 }
 0xffc   : > { %v3116_v17 = vadd.f32 %v3747_v15, %v3115_v16 }
 0xffd   : > { %v3974_v19 = vpop.f32.mrf.mxu0 }
 0xffe   : > { %v3122_v21 = vmul.f32 %v3116_v17, %v3116_v17 }
 0xfff   : > { %v3118_v22 = vpop.f32.mrf.mxu0 }
0x1000   : > { %v3124_v23 = vmul.f32 %v3122_v21, %v3116_v17  ;;  %v3119_v25 = vadd.f32 %v3747_v15, %v3118_v22 }
0x1001   : > { %v3975_v26 = vpop.f32.mrf.mxu0 }
0x1002   : > { %v3126_v37 = vmul.f32 0.044715, %v3124_v23  ;;  %v3123_v38 = vmul.f32 %v3119_v25, %v3119_v25 }
0x1004   : > { %v3128_v27 = vadd.f32 %v3126_v37, %v3116_v17  ;;  %v3125_v28 = vmul.f32 %v3123_v38, %v3119_v25 }
0x1006   : > { %v3130_v52 = vmul.f32 0.7978846, %v3128_v27  ;;  %v3127_v29 = vmul.f32 0.044715, %v3125_v28 }
0x1008   : > { %4113 = vtanh.f32 %v3130_v52  ;;  %v3129_v30 = vadd.f32 %v3127_v29, %v3119_v25 }
0x100a   : > { %v3131_v31 = vmul.f32 0.7978846, %v3129_v30 }
0x100c   : > { %4115 = vtanh.f32 %v3131_v31 }
0x1015   : > { %v4114_v12 = vpop.eup %4113 }
0x1016   : > { %v3134_v32 = vadd.f32 1.0, %v4114_v12 }
0x1018   : > { %v3136_v34 = vmul.f32 0.5, %v3134_v32 }
0x1019   : > { %v4116_v33 = vpop.eup %4115 }
0x101a   : > { %v3135_v35 = vadd.f32 1.0, %v4116_v33  ;;  %v3138_v39 = vmul.f32 %v3136_v34, %v3116_v17 }
0x101c   : > { %v3137_v36 = vmul.f32 0.5, %v3135_v35 }
0x101e   : > { %v3139_v40 = vmul.f32 %v3137_v36, %v3119_v25 }
0x1020   : > { %v3140_v20 = vpack.c.bf16 %v3139_v40, %v3138_v39 }
0x1022   : > { %3993 = vmatmul.mubr.bf16.vlgmr.msra.gmra.mxu1 %v3140_v20 }
0x10e2   : > { %v3246_v44 = vpop.f32.mrf.mxu1 }
0x10e3   : > { %v3247_v45 = vadd.f32 %v3751_v42, %v3246_v44 }
0x10e4   : > { %v3994_v46 = vpop.f32.mrf.mxu1 }
0x10e5   : > { %v3253_v50 = vadd.f32 %v3247_v45, %v4712_v18 }
0x10e6   : > { %v3249_v51 = vpop.f32.mrf.mxu1 }
0x10e7   : > { %v3255_v54 = vadd.f32 %v3253_v50, %v3008_v47  ;;  %v3250_v55 = vadd.f32 %v3751_v42, %v3249_v51 }
0x10e8   : > { %v3995_v56 = vpop.f32.mrf.mxu1 }
0x10e9   : > { %3257 = vst.msk [vmem:[#allocation2] sm:$0xff] %vm1214_vm4, %v3255_v54  ;;  %v3254_v58 = vadd.f32 %v3250_v55, %v4717_v24  ;;  %3262 = sbr.rel (%p3760_p5) target bundleno = 5015 (0x1397), region = 128 }
0x10eb   : > { %v3256_v59 = vadd.f32 %v3254_v58, %v3009_v57 }
0x10ed   : > { %3258 = vst.msk [vmem:[#allocation2 + $0x8] sm:$0xff] %vm1214_vm4, %v3256_v59 }
0x10ee   : > { %v3267_v9 = vrot.slane %v3256_v59, 7  ;;  %vm3268_vm10 = vcmask 1041409   ;;  %vm3271_vm11 = vcmask 254976   ;;  %v3342_v6 = vld [vmem:[%s4919_s13 + $0x8] sm:$0x3]  ;;  %v3341_v10 = vld [vmem:[%s4919_s13] sm:$0xff] }
0x10ef   : > { %v3344_v7 = vmul.f32 %v3342_v6, %v3342_v6  ;;  %v3343_v11 = vmul.f32 %v3341_v10, %v3341_v10  ;;  %v3761_v16 = vld [vmem:[%s4920_s10] ss:$0 sm:$0xff]  ;;  %v4206_v35 = vmov 0.0   ;;  %vm4207_vm12 = vmmov 0   ;;  %v3766_v41 = vld [vmem:[#allocation3] ss:$0 sm:$0xff] }
0x10f0   : > { %v3269_v18 = vsel %vm3268_vm10, %v3267_v9, %v3255_v54  ;;  %v3762_v23 = vld [vmem:[%s4921_s25] ss:$0 sm:$0xff]  ;;  %3996 = vmatprep.subr.mxu0 %v4206_v35  ;;  %4000 = vmatprep.mubr.msk.f32.mxu0 %vm4207_vm12, %v4206_v35  ;;  %v4208_v42 = vmov 0   ;;  %vm3450_vm13 = vcmask 74752  }
0x10f1   : > { %v3272_v60 = vsel %vm3271_vm11, %v3269_v18, 0.0  ;;  %v3348_v8 = vsel %vm3271_vm11, %v3344_v7, 0.0  ;;  %v3345_v49 = vsel %vm1214_vm4, %v3343_v11, 0.0  ;;  %4117 = vset.pattern.permute.xlu1 %v4208_v42  ;;  %4118 = vset.pattern.permute.xlu0 %v4208_v42 }
0x10f2   : > { %3273 = vadd.xlane.f32.xlu0 %v3272_v60  ;;  %3349 = vadd.xlane.f32.xlu1 %v3348_v8 }
0x117b   : > { %v3274_v61 = vpop.xlane.xlu0 %3273  ;;  %v3350_v12 = vpop.xlane.xlu1 %3349 }
0x117c   : > { %v3275_v62 = vmul.f32 0.03125, %v3274_v61  ;;  %v3352_v32 = vmax.f32 %v3350_v12, 1e-24 }
0x117e   : > { %v3277_v63 = vrot.slane %v3275_v62, 1  ;;  %v3280_v0 = vsub.f32 %v3255_v54, %v3275_v62 }
0x1180   : > { %v3281_v1 = vsub.f32 %v3256_v59, %v3277_v63  ;;  %v3282_v2 = vmul.f32 %v3280_v0, %v3280_v0 }
0x1182   : > { %v3283_v24 = vmul.f32 %v3281_v1, %v3281_v1 }
0x1184   : > { %v3286_v3 = vrot.slane %v3283_v24, 7 }
0x1186   : > { %v3287_v4 = vsel %vm3268_vm10, %v3286_v3, %v3282_v2 }
0x1187   : > { %v3289_v5 = vsel %vm3271_vm11, %v3287_v4, 0.0 }
0x1188   : > { %3290 = vadd.xlane.f32.xlu0 %v3289_v5 }
0x118c   : > { %3346 = vadd.xlane.f32.xlu0 %v3345_v49 }
0x1211   : > { %v3291_v53 = vpop.xlane.xlu0 %3290 }
0x1212   : > { %v3292_v13 = vmul.f32 0.03125, %v3291_v53 }
0x1214   : > { %v3293_v14 = vadd.f32 1e-06, %v3292_v13 }
0x1215   : > { %v3347_v33 = vpop.xlane.xlu0 %3346 }
0x1216   : > { %4119 = vrsqrt.f32 %v3293_v14  ;;  %v3351_v34 = vmax.f32 %v3347_v33, 1e-24 }
0x1217   : > { %4121 = vrsqrt.f32 %v3352_v32 }
0x1218   : > { %4123 = vrsqrt.f32 %v3351_v34 }
0x1223   : > { %v4120_v15 = vpop.eup %4119 }
0x1224   : > { %v3296_v17 = vrot.slane %v4120_v15, 1  ;;  %v3299_v19 = vmul.f32 %v4120_v15, %v3280_v0  ;;  %v4122_v36 = vpop.eup %4121 }
0x1225   : > { %v3356_v39 = vmul.f32 %v4122_v36, %v3342_v6  ;;  %v4124_v40 = vpop.eup %4123 }
0x1226   : > { %v3300_v21 = vmul.f32 %v3296_v17, %v3281_v1  ;;  %v3307_v22 = vmul.f32 %v3761_v16, %v3299_v19  ;;  %v3355_v20 = vmul.f32 %v4124_v40, %v3341_v10 }
0x1227   : > { %3997 = vmatpush3.xpose.msk.msra.mxu0 %vm1214_vm4, %v3356_v39 }
0x1228   : > { %v3308_v25 = vmul.f32 %v3761_v16, %v3300_v21  ;;  %v3315_v26 = vadd.f32 %v3762_v23, %v3307_v22  ;;  %3998 = vmatprep.subr.mxu0 %v4206_v35 }
0x122a   : > { %v3316_v37 = vadd.f32 %v3762_v23, %v3308_v25  ;;  %v3323_v28 = vmul.f32 %v3315_v26, %v3315_v26 }
0x122b   : > { %3999 = vmatpush3.xpose.msk.msra.mxu0 %vm1214_vm4, %v3355_v20 }
0x122c   : > { %v3319_v38 = vrot.slane %v3316_v37, 7  ;;  %v3324_v27 = vmul.f32 %v3316_v37, %v3316_v37 }
0x122e   : > { %v3327_v52 = vrot.slane %v3324_v27, 7  ;;  %v3320_v29 = vsel %vm3268_vm10, %v3319_v38, %v3315_v26 }
0x122f   : > { %3322 = vst.msk [vmem:[#allocation6] sm:$0x3] %vm3271_vm11, %v3320_v29 }
0x1230   : > { %v3328_v30 = vsel %vm3268_vm10, %v3327_v52, %v3323_v28 }
0x1231   : > { %v3330_v31 = vsel %vm3271_vm11, %v3328_v30, 0.0 }
0x1232   : > { %3331 = vadd.xlane.f32.xlu1 %v3330_v31 }
0x1243   : > { %3446 = vperm.xlu1 %4117, %v3766_v41  }
0x12bb   : > { %v3332_v43 = vpop.xlane.xlu1 %3331 }
0x12bc   : > { %v3333_v44 = vmax.f32 %v3332_v43, 1e-24 }
0x12be   : > { %4125 = vrsqrt.f32 %v3333_v44 }
0x12bf   : > { %v3447_v54 = vpop.permute.xlu1 %3446 }
0x12cb   : > { %v4126_v45 = vpop.eup %4125 }
0x12cc   : > { %v3336_v46 = vrot.slane %v4126_v45, 1  ;;  %v3339_v48 = vmul.f32 %v4126_v45, %v3315_v26 }
0x12ce   : > { %v3340_v47 = vmul.f32 %v3336_v46, %v3316_v37 }
0x12d0   : > { %v3359_v50 = vrot.slane %v3340_v47, 7 }
0x12d2   : > { %v3360_v51 = vsel %vm3268_vm10, %v3359_v50, %v3339_v48 }
0x12d3   : > { %4001 = vmatmul.mubr.msk.f32.vlgmr.msra.gmra.mxu0 %vm1214_vm4, %v3360_v51 }
0x1393   : > { %v3435_v55 = vpop.f32.mrf.mxu0 }
0x1394   : > { %v3449_v56 = vmul.f32 %v3447_v54, %v3435_v55 }
0x1395   : > { %v4002_v57 = vpop.f32.mrf.mxu0 }
0x1396   : > { %3451 = vst.msk [vmem:[#allocation4] sm:$0x3] %vm3450_vm13, %v3449_v56 }
0x1397 PF: > { %s4922_s7 = sld [smem:[#allocation11_spill]]  ;;  %s4209_s21 = smov [#allocation4]  }
0x1398   : > { %s3459_s30 = sshll.u32 %s4209_s21, 4  ;;  %s4210_s26 = smov [#allocation6]   ;;  %s3460_s30 = int_to_ptr.vmem [resolvable:$true] %s3459_s30 }
0x1399   : > { %s3470_s29 = sshll.u32 %s4210_s26, 4  ;;  %s4127_s6 = scalar_lea.vmem %s3460_s30, 32  ;;  %s3471_s29 = int_to_ptr.vmem [resolvable:$true] %s3470_s29 }
0x139a   : > { %p4128_p7 = scmp.ne.s32.totalorder %s3460_s30, %s4127_s6  ;;  %p4134_p10 = scmp.lt.s32.totalorder %s3460_s30, %s3460_s30 }
0x139b   : > { %p4135_p11 = scmp.lt.s32.totalorder %s4127_s6, %s4127_s6 }
0x139d   : > { %p4011_p6 = scmp.eq.s32.totalorder %s4922_s7, 1  ;;  %p4136_p12 = por %p4135_p11, %p4134_p10 }
0x139f   : > { %p4129_p8 = pnand %p4128_p7, %p4011_p6 }
0x13a1   : > { %p4130_p9 = pneg %p4129_p8 }
0x13a3   : > { %p4137_p13 = pnand %p4136_p12, %p4130_p9 }
0x13a5   : > { %4140 = shalt.err (!%p4137_p13)
}
0x13a6   : > { %s4923_s0 = sld [smem:[#allocation27_spill]]  ;;  %s4151_s9 = scalar_lea.vmem %s3471_s29, 32 }
0x13a7   : > { %p4152_p0 = scmp.ne.s32.totalorder %s3471_s29, %s4151_s9  ;;  %p4158_p3 = scmp.lt.s32.totalorder %s3471_s29, %s3471_s29 }
0x13a8   : > { %p4159_p4 = scmp.lt.s32.totalorder %s4151_s9, %s4151_s9 }
0x13a9   : > { %p4153_p1 = pnand %p4152_p0, %p4011_p6 }
0x13aa   : > { %p4160_p5 = por %p4159_p4, %p4158_p3 }
0x13ab   : > { %p4154_p2 = pneg %p4153_p1 }
0x13ac   : > { %4004 = dma.vmem_to_hbm [thread:$0]  (%p4011_p6), %s3460_s30, 32, %s4923_s0, [#allocation5]  }
0x13ad   : > { %p4161_p7 = pnand %p4160_p5, %p4154_p2 }
0x13af   : > { %4164 = shalt.err (!%p4161_p7)
}
0x13b0   : > { %s4924_s22 = sld [smem:[#allocation28_spill]] }
0x13b6   : > { %4006 = dma.vmem_to_hbm [thread:$0]  (%p4011_p6), %s3471_s29, 32, %s4924_s22, [#allocation7]  }
0x13b7   : > { %4180 = dma.done.wait (%p4011_p6), [#allocation5], 32  }
0x13b8   : > { %4182 = vsyncadd (%p4011_p6), [#allocation5], 4294967264 }
0x13b9   : > { %4184 = dma.done.wait (%p4011_p6), [#allocation7], 32  }
0x13ba   : > { %4186 = vsyncadd (%p4011_p6), [#allocation7], 4294967264 }
0x13bb PF: > { %s4925_s27 = sld [smem:[#allocation10_spill]] }
0x13c1   : > { %s41_s7 = sadd.s32 1, %s4925_s27  }
0x13c2   : > { %p38_p8 = scmp.ge.s32.totalorder %s41_s7, 4  }
0x13c4   :  { %40 = sbr.rel (!%p38_p8) target bundleno = 20 (0x14), region = 208 }
0x13c9   :  { %3487 = vsyncpa [#allocation5], 1 }
0x13ca   :  { %3489 = vsyncpa [#allocation5 + $0x1], 1 }
0x13cb   :  { %3490 = vsyncpa [#allocation7], 1 }

</bundles_post_ra>
